<compile_context>
chip_gen: v5e
topology: v5e:2x2
jax: 0.10.0
libtpu: 0.0.40
codegen_flags: <defaults>
</compile_context>

<pallas_src>
import jax
import jax.numpy as jnp
from jax import lax
from jax.experimental import pallas as pl
from jax.experimental.pallas import tpu as pltpu


# ----------------------------------------------------------------------------
# Pallas kernel: one grid step == one (batch, query-tile).
# ----------------------------------------------------------------------------
# TODO(synk): for very large H*W (>~2K, esp. v7x's 64 MiB VMEM) switch the KV
# axis to a flash-style online-softmax loop and hoist the K|V projection into
# per-batch VMEM scratch instead of rebuilding it per query tile.
def ca_kernel(x_ref,            # (1, Cin, HW)  f32, full spatial extent
              wc_ref, bc_ref,   # convert: (C, Cin) f32, (C, 1) f32
              wq_ref, bq_ref,   # query:   (C, C)  bf16, (C, 1) f32
              wkv_ref, bkv_ref,  # K | gamma*V | ones: (C+72, C) bf16, (C+72, 1) f32
              g_ref,            # (1, C, 1) f32   gate = 1 + sigmoid(...)
              o_ref):           # (1, C, tq) f32
    C = o_ref.shape[1]
    tq = o_ref.shape[2]
    hw = x_ref.shape[2]

    x_full = x_ref[0]                                             # (Cin, HW)

    # convert (1x1 conv), channel-major: xc[c, i] = sum_cin wc[c, cin] x[cin, i]
    xc = jnp.dot(wc_ref[...], x_full,
                 preferred_element_type=jnp.float32) + bc_ref[...]   # (C, HW)

    # fused K | gamma*V | ones projection: one bf16 MXU matmul, N = HW lanes.
    kv = jnp.dot(wkv_ref[...], xc.astype(jnp.bfloat16),
                 preferred_element_type=jnp.float32) + bkv_ref[...]  # (C+72, HW)
    k = kv[0:C]                       # (C, HW)
    vg = kv[C:C + 72]                 # (72, HW): rows 0..63 = gamma*V, 64..71 = 1.0

    # this grid step's query tile (static branch: at tq == HW reuse xc directly)
    if tq == hw:
        xc_t = xc
    else:
        qi = pl.program_id(1)
        col0 = pl.multiple_of(qi * tq, 128)
        x_t = x_ref[0, :, pl.ds(col0, tq)]                        # (Cin, tq)
        xc_t = jnp.dot(wc_ref[...], x_t,
                       preferred_element_type=jnp.float32) + bc_ref[...]
    q_t = jnp.dot(wq_ref[...], xc_t.astype(jnp.bfloat16),
                  preferred_element_type=jnp.float32) + bq_ref[...]   # (C, tq)

    # attention scores.  Exactly one operand relayout is unavoidable when both
    # q and k come out channel-major; we transpose the *small* (C, tq) q tile.
    # k / v / p are consumed by the MXU without any materialized transpose
    # (dot_general contracts on the last dims directly).
    e = jnp.dot(q_t.T.astype(jnp.bfloat16), k.astype(jnp.bfloat16),
                preferred_element_type=jnp.float32)               # (tq, HW)
    m = jnp.max(e, axis=-1, keepdims=True)                        # (tq, 1)
    p = jnp.exp(e - m)                                            # f32 elementwise

    # attention output and softmax row-sums from the same MXU matmul:
    # rows 0..C-1 of `raw` are gamma * (p @ V^T), rows C..C+7 are sum_j p[i, j].
    raw = lax.dot_general(vg.astype(jnp.bfloat16), p.astype(jnp.bfloat16),
                          dimension_numbers=(((1,), (1,)), ((), ())),
                          preferred_element_type=jnp.float32)      # (72, tq)
    inv = pl.reciprocal(raw[C:C + 1, :], approx=True)              # (1, tq), EUP

    # gamma*softmax(QK^T)V + xc*(1 + sigmoid-gate): lane-dense (C, tq) store.
    o_ref[0] = raw[0:C, :] * inv + xc_t * g_ref[0]


# ----------------------------------------------------------------------------
# Wrapper: reshape glue (no HBM transposes), parameter packing, pallas_call.
# ----------------------------------------------------------------------------
@jax.jit
def ca_forward(x_nchw, p):
    B, Cin, H, W = x_nchw.shape
    HW = H * W
    C = 64

    # NCHW -> (B, C, H*W) is a pure reshape; the kernel is channel-major.
    x = x_nchw.reshape(B, Cin, HW)

    # channel "squeeze" gate (two 64x64 matvecs per image).  mean-over-space
    # commutes with the 1x1 convert conv, so computing it here is exact.
    xbar = jnp.mean(x, axis=2)                                   # (B, Cin)
    x0 = xbar @ p["wc"].T + p["bc"]                              # (B, C)
    h1 = jnp.maximum(x0 @ p["wg1"].T + p["bg1"], 0.0)            # conv1+bn1+relu
    h2 = jax.nn.sigmoid(h1 @ p["wg2"].T + p["bg2"])              # conv2+bn2+sigmoid
    gate = (1.0 + h2)[:, :, None].astype(jnp.float32)            # (B, C, 1)

    # pack kernel params: K | gamma*V | ones fused projection.  The trailing
    # ones rows give the softmax row-sums straight out of the p @ V^T matmul.
    wkv = jnp.concatenate(
        [p["wk"], p["gamma"] * p["wv"], jnp.zeros((8, C), jnp.float32)], axis=0)
    bkv = jnp.concatenate(
        [p["bk"], p["gamma"] * p["bv"], jnp.ones((8,), jnp.float32)], axis=0)[:, None]
    wq_bf = p["wq"].astype(jnp.bfloat16)
    wkv_bf = wkv.astype(jnp.bfloat16)
    bc = p["bc"][:, None]
    bq = p["bq"][:, None]

    # query tiling: one grid step per (batch, q-tile); K/V are rebuilt from the
    # full spatial extent inside the kernel.
    if HW > 512 and HW % 512 == 0:
        tq = 512
    else:
        tq = HW
    nq = HW // tq

    cp = dict(dimension_semantics=("parallel", "parallel"))
    # raise the scoped VMEM limit only when large H*W would exceed the default.
    vmem_need = 4 * (HW * (Cin + C + 136 + 2 * tq) + 200 * tq) * 2 + (2 << 20)
    if vmem_need > 24 * (1 << 20):
        cp["vmem_limit_bytes"] = int(min(vmem_need + (8 << 20), 112 * (1 << 20)))

    out = pl.pallas_call(
        ca_kernel,
        out_shape=jax.ShapeDtypeStruct((B, C, HW), jnp.float32),
        grid=(B, nq),
        in_specs=[
            pl.BlockSpec((1, Cin, HW), lambda b, qi: (b, 0, 0)),   # x (full spatial)
            pl.BlockSpec((C, Cin), lambda b, qi: (0, 0)),          # wc
            pl.BlockSpec((C, 1), lambda b, qi: (0, 0)),            # bc
            pl.BlockSpec((C, C), lambda b, qi: (0, 0)),            # wq (bf16)
            pl.BlockSpec((C, 1), lambda b, qi: (0, 0)),            # bq
            pl.BlockSpec((C + 72, C), lambda b, qi: (0, 0)),       # wk|gamma*wv|0 (bf16)
            pl.BlockSpec((C + 72, 1), lambda b, qi: (0, 0)),       # bk|gamma*bv|1
            pl.BlockSpec((1, C, 1), lambda b, qi: (b, 0, 0)),      # gate
        ],
        out_specs=pl.BlockSpec((1, C, tq), lambda b, qi: (b, 0, qi)),
        compiler_params=pltpu.CompilerParams(**cp),
    )(x, p["wc"], bc, wq_bf, bq, wkv_bf, bkv, gate)

    return out.reshape(B, C, H, W)


# ----------------------------------------------------------------------------
# Deterministic parameter construction (shapes follow CA.__init__), with
# BatchNorm folded into the conv1/conv2 center taps.
# ----------------------------------------------------------------------------
def make_params(in_channel, key):
    C = 64
    eps = 1e-5
    ks = jax.random.split(key, 20)
    n = lambda k, shape, s=0.1: jax.random.normal(k, shape, jnp.float32) * s

    # 1x1 convs stored channel-major as (out, in) matrices.
    wc = n(ks[0], (C, in_channel)); bc = n(ks[1], (C,), 0.05)
    wq = n(ks[2], (C, C)); bq = n(ks[3], (C,), 0.05)
    wk = n(ks[4], (C, C)); bk = n(ks[5], (C,), 0.05)
    wv = n(ks[6], (C, C)); bv = n(ks[7], (C,), 0.05)

    # 3x3 convs on a 1x1 spatial tensor (padding 1): only the center tap matters.
    w1c = n(ks[8], (C, C, 3, 3))[:, :, 1, 1]
    w2c = n(ks[9], (C, C, 3, 3))[:, :, 1, 1]
    b1 = n(ks[10], (C,), 0.05)
    b2 = n(ks[11], (C,), 0.05)

    # BatchNorm (inference mode) -> per-channel scale/shift -> folded into convs.
    def bn_fold(kw, kb, km, kvar):
        w = 1.0 + n(kw, (C,), 0.1)
        b = n(kb, (C,), 0.05)
        rm = n(km, (C,), 0.05)
        rv = 1.0 + jnp.abs(n(kvar, (C,), 0.1))
        scale = w / jnp.sqrt(rv + eps)
        return scale, b - rm * scale

    s1, t1 = bn_fold(ks[12], ks[13], ks[14], ks[15])
    s2, t2 = bn_fold(ks[16], ks[17], ks[18], ks[19])
    wg1 = w1c * s1[:, None]; bg1 = b1 * s1 + t1
    wg2 = w2c * s2[:, None]; bg2 = b2 * s2 + t2

    # PyTorch inits gamma to zeros(1); use a deterministic nonzero value so the
    # attention path actually contributes in this synthetic test.
    gamma = jnp.asarray(0.25, dtype=jnp.float32)

    return dict(wc=wc, bc=bc, wq=wq, bq=bq, wk=wk, bk=bk, wv=wv, bv=bv,
                wg1=wg1, bg1=bg1, wg2=wg2, bg2=bg2, gamma=gamma)


# ----------------------------------------------------------------------------
# Pure-JAX f32 reference (same math, no Pallas, no bf16) for correctness.
# ----------------------------------------------------------------------------
def ca_reference(x_nchw, p):
    B, Cin, H, W = x_nchw.shape
    HW = H * W
    x = x_nchw.reshape(B, Cin, HW)
    xc = jnp.einsum("oc,bci->boi", p["wc"], x) + p["bc"][None, :, None]
    q = jnp.einsum("oc,bci->boi", p["wq"], xc) + p["bq"][None, :, None]
    k = jnp.einsum("oc,bci->boi", p["wk"], xc) + p["bk"][None, :, None]
    v = jnp.einsum("oc,bci->boi", p["wv"], xc) + p["bv"][None, :, None]
    energy = jnp.einsum("bci,bcj->bij", q, k)
    attn = jax.nn.softmax(energy, axis=-1)
    attn_out = jnp.einsum("bij,bcj->bci", attn, v)
    x0 = xc.mean(axis=2)                                          # (B, 64)
    h1 = jnp.maximum(x0 @ p["wg1"].T + p["bg1"], 0.0)
    h2 = jax.nn.sigmoid(h1 @ p["wg2"].T + p["bg2"])
    out = p["gamma"] * attn_out + xc * (1.0 + h2)[:, :, None]
    return out.reshape(B, 64, H, W)


if __name__ == "__main__":
    B, Cin, H, W = 2, 4, 16, 16
    key = jax.random.PRNGKey(0)
    kx, kp = jax.random.split(key)
    x = jax.random.normal(kx, (B, Cin, H, W), jnp.float32)
    params = make_params(Cin, kp)

    out = jax.block_until_ready(ca_forward(x, params))
    ref = jax.block_until_ready(ca_reference(x, params))

    assert out.shape == (B, 64, H, W), out.shape
    err = float(jnp.max(jnp.abs(out - ref)))
    # The kernel uses bf16 MXU operands (perf-review item) against an all-f32
    # reference; typical |out| is O(0.3), so a bf16-level tolerance applies.
    assert err < 2e-2, f"max abs err {err}"
    print("KERNEL_OK")
</pallas_src>

<mosaic_0001>
module attributes {stable_mosaic.version = 11 : i64} {
  func.func @ca_kernel(%arg0: i32, %arg1: i32, %arg2: memref<1x4x256xf32, #tpu.memory_space<vmem>>, %arg3: memref<64x4xf32, #tpu.memory_space<vmem>>, %arg4: memref<64x1xf32, #tpu.memory_space<vmem>>, %arg5: memref<64x64xbf16, #tpu.memory_space<vmem>>, %arg6: memref<64x1xf32, #tpu.memory_space<vmem>>, %arg7: memref<136x64xbf16, #tpu.memory_space<vmem>>, %arg8: memref<136x1xf32, #tpu.memory_space<vmem>>, %arg9: memref<1x64x1xf32, #tpu.memory_space<vmem>>, %arg10: memref<1x64x256xf32, #tpu.memory_space<vmem>>) attributes {dimension_semantics = [#tpu.dimension_semantics<parallel>, #tpu.dimension_semantics<parallel>], iteration_bounds = array<i64: 2, 1>, scalar_prefetch = 0 : i64, scratch_operands = 0 : i64, tpu.core_type = #tpu.core_type<tc>, window_params = [{transform_indices = @transform_0, window_bounds = array<i64: 1, 4, 256>}, {pipeline_mode = #tpu.pipeline_mode<synchronous>, transform_indices = @transform_1, window_bounds = array<i64: 64, 4>}, {pipeline_mode = #tpu.pipeline_mode<synchronous>, transform_indices = @transform_2, window_bounds = array<i64: 64, 1>}, {pipeline_mode = #tpu.pipeline_mode<synchronous>, transform_indices = @transform_3, window_bounds = array<i64: 64, 64>}, {pipeline_mode = #tpu.pipeline_mode<synchronous>, transform_indices = @transform_4, window_bounds = array<i64: 64, 1>}, {pipeline_mode = #tpu.pipeline_mode<synchronous>, transform_indices = @transform_5, window_bounds = array<i64: 136, 64>}, {pipeline_mode = #tpu.pipeline_mode<synchronous>, transform_indices = @transform_6, window_bounds = array<i64: 136, 1>}, {transform_indices = @transform_7, window_bounds = array<i64: 1, 64, 1>}, {transform_indices = @transform_8, window_bounds = array<i64: 1, 64, 256>}]} {
    %c0 = arith.constant 0 : index
    %c0_0 = arith.constant 0 : index
    %c0_1 = arith.constant 0 : index
    %0 = vector.load %arg2[%c0, %c0_0, %c0_1] : memref<1x4x256xf32, #tpu.memory_space<vmem>>, vector<1x4x256xf32>
    %1 = vector.shape_cast %0 : vector<1x4x256xf32> to vector<4x256xf32>
    %c0_2 = arith.constant 0 : index
    %c0_3 = arith.constant 0 : index
    %2 = vector.load %arg3[%c0_2, %c0_3] : memref<64x4xf32, #tpu.memory_space<vmem>>, vector<64x4xf32>
    %cst = arith.constant dense<0.000000e+00> : vector<64x256xf32>
    %3 = tpu.matmul %2, %1, %cst {dimension_numbers = #tpu.dot_dimension_numbers<[1], [0], [0], [1], [0, 0, 1, 1], [], []>} : vector<64x4xf32>, vector<4x256xf32>, vector<64x256xf32> -> vector<64x256xf32>
    %c0_4 = arith.constant 0 : index
    %c0_5 = arith.constant 0 : index
    %4 = vector.load %arg4[%c0_4, %c0_5] : memref<64x1xf32, #tpu.memory_space<vmem>>, vector<64x1xf32>
    %5 = vector.broadcast %4 : vector<64x1xf32> to vector<64x256xf32>
    %6 = arith.addf %3, %5 : vector<64x256xf32>
    %c0_6 = arith.constant 0 : index
    %c0_7 = arith.constant 0 : index
    %7 = vector.load %arg7[%c0_6, %c0_7] : memref<136x64xbf16, #tpu.memory_space<vmem>>, vector<136x64xbf16>
    %8 = arith.truncf %6 : vector<64x256xf32> to vector<64x256xbf16>
    %cst_8 = arith.constant dense<0.000000e+00> : vector<136x256xf32>
    %9 = tpu.matmul %7, %8, %cst_8 {dimension_numbers = #tpu.dot_dimension_numbers<[1], [0], [0], [1], [0, 0, 1, 1], [], []>} : vector<136x64xbf16>, vector<64x256xbf16>, vector<136x256xf32> -> vector<136x256xf32>
    %c0_9 = arith.constant 0 : index
    %c0_10 = arith.constant 0 : index
    %10 = vector.load %arg8[%c0_9, %c0_10] : memref<136x1xf32, #tpu.memory_space<vmem>>, vector<136x1xf32>
    %11 = vector.broadcast %10 : vector<136x1xf32> to vector<136x256xf32>
    %12 = arith.addf %9, %11 : vector<136x256xf32>
    %13 = vector.extract_strided_slice %12 {offsets = [0, 0], sizes = [64, 256], strides = [1, 1]} : vector<136x256xf32> to vector<64x256xf32>
    %14 = vector.extract_strided_slice %12 {offsets = [64, 0], sizes = [72, 256], strides = [1, 1]} : vector<136x256xf32> to vector<72x256xf32>
    %c0_11 = arith.constant 0 : index
    %c0_12 = arith.constant 0 : index
    %15 = vector.load %arg5[%c0_11, %c0_12] : memref<64x64xbf16, #tpu.memory_space<vmem>>, vector<64x64xbf16>
    %16 = arith.truncf %6 : vector<64x256xf32> to vector<64x256xbf16>
    %cst_13 = arith.constant dense<0.000000e+00> : vector<64x256xf32>
    %17 = tpu.matmul %15, %16, %cst_13 {dimension_numbers = #tpu.dot_dimension_numbers<[1], [0], [0], [1], [0, 0, 1, 1], [], []>} : vector<64x64xbf16>, vector<64x256xbf16>, vector<64x256xf32> -> vector<64x256xf32>
    %c0_14 = arith.constant 0 : index
    %c0_15 = arith.constant 0 : index
    %18 = vector.load %arg6[%c0_14, %c0_15] : memref<64x1xf32, #tpu.memory_space<vmem>>, vector<64x1xf32>
    %19 = vector.broadcast %18 : vector<64x1xf32> to vector<64x256xf32>
    %20 = arith.addf %17, %19 : vector<64x256xf32>
    %21 = tpu.transpose %20, [1, 0] : vector<64x256xf32> -> vector<256x64xf32>
    %22 = arith.truncf %21 : vector<256x64xf32> to vector<256x64xbf16>
    %23 = arith.truncf %13 : vector<64x256xf32> to vector<64x256xbf16>
    %cst_16 = arith.constant dense<0.000000e+00> : vector<256x256xf32>
    %24 = tpu.matmul %22, %23, %cst_16 {dimension_numbers = #tpu.dot_dimension_numbers<[1], [0], [0], [1], [0, 0, 1, 1], [], []>} : vector<256x64xbf16>, vector<64x256xbf16>, vector<256x256xf32> -> vector<256x256xf32>
    %cst_17 = arith.constant dense<0xFF800000> : vector<256xf32>
    %25 = vector.multi_reduction <maximumf>, %24, %cst_17 [1] : vector<256x256xf32> to vector<256xf32>
    %26 = vector.shape_cast %25 : vector<256xf32> to vector<256x1xf32>
    %27 = vector.broadcast %26 : vector<256x1xf32> to vector<256x256xf32>
    %28 = arith.subf %24, %27 : vector<256x256xf32>
    %29 = math.exp %28 : vector<256x256xf32>
    %30 = arith.truncf %14 : vector<72x256xf32> to vector<72x256xbf16>
    %31 = arith.truncf %29 : vector<256x256xf32> to vector<256x256xbf16>
    %cst_18 = arith.constant dense<0.000000e+00> : vector<72x256xf32>
    %32 = tpu.matmul %30, %31, %cst_18 {dimension_numbers = #tpu.dot_dimension_numbers<[1], [1], [0], [0], [0, 0, 1, 0], [], []>} : vector<72x256xbf16>, vector<256x256xbf16>, vector<72x256xf32> -> vector<72x256xf32>
    %33 = vector.extract_strided_slice %32 {offsets = [64, 0], sizes = [1, 256], strides = [1, 1]} : vector<72x256xf32> to vector<1x256xf32>
    %34 = tpu.reciprocal %33 {approx = true} : vector<1x256xf32> -> vector<1x256xf32>
    %35 = vector.extract_strided_slice %32 {offsets = [0, 0], sizes = [64, 256], strides = [1, 1]} : vector<72x256xf32> to vector<64x256xf32>
    %36 = vector.broadcast %34 : vector<1x256xf32> to vector<64x256xf32>
    %37 = arith.mulf %35, %36 : vector<64x256xf32>
    %c0_19 = arith.constant 0 : index
    %c0_20 = arith.constant 0 : index
    %c0_21 = arith.constant 0 : index
    %38 = vector.load %arg9[%c0_19, %c0_20, %c0_21] : memref<1x64x1xf32, #tpu.memory_space<vmem>>, vector<1x64x1xf32>
    %39 = vector.shape_cast %38 : vector<1x64x1xf32> to vector<64x1xf32>
    %40 = vector.broadcast %39 : vector<64x1xf32> to vector<64x256xf32>
    %41 = arith.mulf %6, %40 : vector<64x256xf32>
    %42 = arith.addf %37, %41 : vector<64x256xf32>
    %c0_22 = arith.constant 0 : index
    %c0_23 = arith.constant 0 : index
    %c0_24 = arith.constant 0 : index
    %43 = vector.load %arg10[%c0_22, %c0_23, %c0_24] : memref<1x64x256xf32, #tpu.memory_space<vmem>>, vector<1x64x256xf32>
    %44 = vector.shape_cast %43 : vector<1x64x256xf32> to vector<64x256xf32>
    %45 = vector.shape_cast %42 : vector<64x256xf32> to vector<1x64x256xf32>
    tpu.vector_store %arg10[%c0_22, %c0_23, %c0_24], %45 {strides = array<i32>} : memref<1x64x256xf32, #tpu.memory_space<vmem>>, vector<1x64x256xf32>,
    return
  }
  func.func @transform_0(%arg0: i32, %arg1: i32) -> (i32, i32, i32) {
    %c0_i32 = arith.constant 0 : i32
    %c0_i32_0 = arith.constant 0 : i32
    %c0_i32_1 = arith.constant 0 : i32
    return %arg0, %c0_i32, %c0_i32_0 : i32, i32, i32
  }
  func.func @transform_1(%arg0: i32, %arg1: i32) -> (i32, i32) {
    %c0_i32 = arith.constant 0 : i32
    %c0_i32_0 = arith.constant 0 : i32
    %c0_i32_1 = arith.constant 0 : i32
    return %c0_i32, %c0_i32_0 : i32, i32
  }
  func.func @transform_2(%arg0: i32, %arg1: i32) -> (i32, i32) {
    %c0_i32 = arith.constant 0 : i32
    %c0_i32_0 = arith.constant 0 : i32
    %c0_i32_1 = arith.constant 0 : i32
    return %c0_i32, %c0_i32_0 : i32, i32
  }
  func.func @transform_3(%arg0: i32, %arg1: i32) -> (i32, i32) {
    %c0_i32 = arith.constant 0 : i32
    %c0_i32_0 = arith.constant 0 : i32
    %c0_i32_1 = arith.constant 0 : i32
    return %c0_i32, %c0_i32_0 : i32, i32
  }
  func.func @transform_4(%arg0: i32, %arg1: i32) -> (i32, i32) {
    %c0_i32 = arith.constant 0 : i32
    %c0_i32_0 = arith.constant 0 : i32
    %c0_i32_1 = arith.constant 0 : i32
    return %c0_i32, %c0_i32_0 : i32, i32
  }
  func.func @transform_5(%arg0: i32, %arg1: i32) -> (i32, i32) {
    %c0_i32 = arith.constant 0 : i32
    %c0_i32_0 = arith.constant 0 : i32
    %c0_i32_1 = arith.constant 0 : i32
    return %c0_i32, %c0_i32_0 : i32, i32
  }
  func.func @transform_6(%arg0: i32, %arg1: i32) -> (i32, i32) {
    %c0_i32 = arith.constant 0 : i32
    %c0_i32_0 = arith.constant 0 : i32
    %c0_i32_1 = arith.constant 0 : i32
    return %c0_i32, %c0_i32_0 : i32, i32
  }
  func.func @transform_7(%arg0: i32, %arg1: i32) -> (i32, i32, i32) {
    %c0_i32 = arith.constant 0 : i32
    %c0_i32_0 = arith.constant 0 : i32
    %c0_i32_1 = arith.constant 0 : i32
    return %arg0, %c0_i32, %c0_i32_0 : i32, i32, i32
  }
  func.func @transform_8(%arg0: i32, %arg1: i32) -> (i32, i32, i32) {
    %c0_i32 = arith.constant 0 : i32
    %c0_i32_0 = arith.constant 0 : i32
    return %arg0, %c0_i32, %arg1 : i32, i32, i32
  }
}

</mosaic_0001>

<bundles_post_ra>
// kernel: ca_forward.1
= control target key start
LH: loop header
LB: loop body
LE: loop exit
PB: predicated region body
PF: predicated region fallthrough
CT: control target
= control target key end

     0   :  { %s2343_s27 = smov 0   ;;  %s2345_s28 = smov 0   ;;  %s3212_s0 = inlined_call_operand.vmem [shape: f32[2,4,256], index: 0, kind: input, shape index: {}]   ;;  %s3213_s1 = inlined_call_operand.vmem [shape: f32[64,4], index: 1, kind: input, shape index: {}]   ;;  %s3214_s2 = inlined_call_operand.vmem [shape: f32[64,1], index: 2, kind: input, shape index: {}]   ;;  %s3215_s3 = inlined_call_operand.vmem [shape: bf16[64,64], index: 3, kind: input, shape index: {}]   ;;  %s3216_s4 = inlined_call_operand.vmem [shape: f32[64,1], index: 4, kind: input, shape index: {}]   ;;  %s3217_s5 = inlined_call_operand.vmem [shape: bf16[136,64], index: 5, kind: input, shape index: {}]   ;;  %s3218_s6 = inlined_call_operand.vmem [shape: f32[136,1], index: 6, kind: input, shape index: {}]   ;;  %s3219_s7 = inlined_call_operand.vmem [shape: f32[2,64,1], index: 7, kind: input, shape index: {}]   ;;  %s3220_s8 = inlined_call_operand.vmem [shape: f32[2,64,256], index: 8, kind: output, shape index: {}]  }
   0x1   :  { %s2347_s29 = smov 0  }
   0x2 LB: > { %s30_s30 = sadd.s32 1, %s2291_s28  ;;  %p1962_p0 = scmp.ge.s32.totalorder %s2295_s29, 1  ;;  %s2295_s29 = sphi %s2347_s29, %s18_s29   ;;  %s2291_s28 = sphi %s2345_s28, %s3330_s28   ;;  %s2287_s27 = sphi %s2343_s27, %s3329_s27  }
   0x3   : > { %p32_p1 = scmp.ge.s32.totalorder %s30_s30, 2  ;;  %p286_p2 = scmp.lt.s32.totalorder %s2295_s29, 3 }
   0x5   : > { %s3332_s30 = smov (%p32_p1, %s30_s30), 0  ;;  %p287_p3 = pnand %p1962_p0, %p286_p2 }
   0x7   : > { %290 = sbr.rel (%p287_p3) target bundleno = 1319 (0x527), region = 52 }
   0xc   : > { %v365_v0 = vld [vmem:[%s3214_s2 + $0x30] sm:$0xff]  ;;  %v363_v1 = vld [vmem:[%s3214_s2 + $0x20] sm:$0xff]  ;;  %p329_p4 = scmp.lt.s32.totalorder %s2287_s27, 1  ;;  %v2297_v2 = vmov 0   ;;  %v366_v5 = vld [vmem:[%s3214_s2 + $0x38] sm:$0xff]  ;;  %vm436_vm0 = vcmask 1043456  }
   0xd   : > { %2138 = vset.pattern.permute.xlu0 %v2297_v2  ;;  %2139 = vset.pattern.permute.xlu1 %v2297_v2  ;;  %v361_v3 = vld [vmem:[%s3214_s2 + $0x10] sm:$0xff]  ;;  %v364_v6 = vld [vmem:[%s3214_s2 + $0x28] sm:$0xff]  ;;  %v362_v7 = vld [vmem:[%s3214_s2 + $0x18] sm:$0xff]  ;;  %vm411_vm1 = vcmask 31744   ;;  %vm693_vm2 = vcmask 523264  }
   0xe   : > { %399 = vperm.xlu0 %2138, %v365_v0   ;;  %389 = vperm.xlu1 %2139, %v363_v1   ;;  %s3334_s27 = smov (!%p329_p4, %s2287_s27), 1  ;;  %v353_v8 = vld [vmem:[%s3213_s1 + $0x10] sm:$0xff]  ;;  %v354_v9 = vld [vmem:[%s3213_s1 + $0x18] sm:$0xff]  ;;  %v359_v12 = vld [vmem:[%s3214_s2] sm:$0xff] }
   0xf   : > { %2140 = vset.pattern.permute.xlu2 %v2297_v2  ;;  %s2095_s15 = sshll.u32 %s3334_s27, 3  ;;  %v360_v13 = vld [vmem:[%s3214_s2 + $0x8] sm:$0xff]  ;;  %v351_v14 = vld [vmem:[%s3213_s1] sm:$0xff]  ;;  %v837_v18 = vld [vmem:[%s3216_s4 + $0x10] sm:$0xff]  ;;  %s2096_s9 = sshll.u32 %s3334_s27, 6 }
  0x10   : > { %379 = vperm.xlu2 %2140, %v361_v3   ;;  %s333_s18 = scalar_lea.vmem %s3212_s0, %s2095_s15  ;;  %v835_v15 = vld [vmem:[%s3216_s4] sm:$0xff]  ;;  %v836_v17 = vld [vmem:[%s3216_s4 + $0x8] sm:$0xff]  ;;  %v838_v20 = vld [vmem:[%s3216_s4 + $0x18] sm:$0xff]  ;;  %s2925_s12 = scalar_lea.vmem %s3219_s7, %s2096_s9 }
  0x11   : > { %v350_v4 = vld [vmem:[%s333_s18] sm:$0xff]  ;;  %v352_v19 = vld [vmem:[%s3213_s1 + $0x8] sm:$0xff]  ;;  %v841_v24 = vld [vmem:[%s3216_s4 + $0x30] sm:$0xff]  ;;  %s2097_s17 = sshll.u32 %s3334_s27, 7 }
  0x12   : > { %408 = vst [vmem:[#allocation1] ss:$2 sm:$0xff] %v350_v4  ;;  %v355_v16 = vld [vmem:[%s3213_s1 + $0x20] sm:$0xff]  ;;  %v356_v21 = vld [vmem:[%s3213_s1 + $0x28] sm:$0xff]  ;;  %v357_v25 = vld [vmem:[%s3213_s1 + $0x30] sm:$0xff]  ;;  %s3157_s19 = scalar_lea.vmem %s3220_s8, %s2097_s17 }
  0x13   : > { %v839_v22 = vld [vmem:[%s3216_s4 + $0x20] sm:$0xff]  ;;  %v840_v23 = vld [vmem:[%s3216_s4 + $0x28] sm:$0xff]  ;;  %v842_v26 = vld [vmem:[%s3216_s4 + $0x38] sm:$0xff] }
  0x14   : > { %v554_v27 = vld [vmem:[%s3218_s6 + $0x30] sm:$0xff]  ;;  %v555_v28 = vld [vmem:[%s3218_s6 + $0x38] sm:$0xff]  ;;  %v552_v30 = vld [vmem:[%s3218_s6 + $0x20] sm:$0xff] }
  0x15   : > { %v358_v29 = vld [vmem:[%s3213_s1 + $0x38] sm:$0xff]  ;;  %v553_v31 = vld [vmem:[%s3218_s6 + $0x28] sm:$0xff]  ;;  %v550_v32 = vld [vmem:[%s3218_s6 + $0x10] sm:$0xff] }
  0x16   : > { %404 = vperm.xlu0 %2138, %v366_v5   ;;  %394 = vperm.xlu1 %2139, %v364_v6   ;;  %v551_v33 = vld [vmem:[%s3218_s6 + $0x18] sm:$0xff]  ;;  %v548_v34 = vld [vmem:[%s3218_s6] sm:$0xff]  ;;  %v549_v35 = vld [vmem:[%s3218_s6 + $0x8] sm:$0xff] }
  0x17   : > { %v556_v36 = vld [vmem:[%s3218_s6 + $0x40] sm:$0xff]  ;;  %v557_v37 = vld [vmem:[%s3218_s6 + $0x48] sm:$0xff]  ;;  %v558_v38 = vld [vmem:[%s3218_s6 + $0x50] sm:$0xff] }
  0x18   : > { %384 = vperm.xlu2 %2140, %v362_v7  }
  0x19   : > { %v409_v10 = vld.sshfl [vmem:[#allocation1] sm:$0xff pattern:$0x75316420]  ;;  %v410_v11 = vld.sshfl [vmem:[#allocation1 + $0x8] sm:$0xff pattern:$0x75316420] }
  0x1a   : > { %2110 = vmatpush.msk.msra.mxu2 %vm436_vm0, %v409_v10  ;;  %2111 = vmatpush.msk.msra.mxu3 %vm436_vm0, %v410_v11 }
  0x1b   : > { %1972 = vmatmul.msk.f32.vlgmr.msra.gmra.mxu2 %vm411_vm1, %v353_v8  ;;  %1982 = vmatmul.msk.f32.vlgmr.msra.gmra.mxu3 %vm411_vm1, %v354_v9 }
  0x1c   : > { %1969 = vmatpush.msk.msra.mxu0 %vm436_vm0, %v409_v10  ;;  %1978 = vmatpush.msk.msra.mxu1 %vm436_vm0, %v410_v11 }
  0x1d   : > { %1970 = vmatmul.msk.f32.vlgmr.msra.gmra.mxu0 %vm411_vm1, %v351_v14  ;;  %1979 = vmatmul.msk.f32.vlgmr.msra.gmra.mxu1 %vm411_vm1, %v351_v14 }
  0x1e   : > { %369 = vperm.xlu0 %2138, %v359_v12   ;;  %374 = vperm.xlu1 %2139, %v360_v13  }
  0x20   : > { %845 = vperm.xlu2 %2140, %v835_v15  }
  0x23   : > { %1973 = vmatmul.msk.f32.gmra.mxu2 %vm411_vm1, %v354_v9  ;;  %1983 = vmatmul.msk.f32.gmra.mxu3 %vm411_vm1, %v355_v16 }
  0x25   : > { %1971 = vmatmul.msk.f32.gmra.mxu0 %vm411_vm1, %v352_v19  ;;  %1980 = vmatmul.msk.f32.gmra.mxu1 %vm411_vm1, %v352_v19 }
  0x26   : > { %850 = vperm.xlu0 %2138, %v836_v17   ;;  %855 = vperm.xlu1 %2139, %v837_v18   ;;  %v2098_v18 = vld [vmem:[%s3217_s5] sm:$0xff] }
  0x28   : > { %860 = vperm.xlu2 %2140, %v838_v20   ;;  %v2106_v20 = vld [vmem:[%s3215_s3] sm:$0xff] }
  0x2b   : > { %1974 = vmatmul.msk.f32.gmra.mxu2 %vm411_vm1, %v355_v16  ;;  %1984 = vmatmul.msk.f32.gmra.mxu3 %vm411_vm1, %v356_v21 }
  0x2d   : > { %1981 = vmatmul.msk.f32.gmra.mxu1 %vm411_vm1, %v353_v8 }
  0x2e   : > { %865 = vperm.xlu0 %2138, %v839_v22   ;;  %870 = vperm.xlu1 %2139, %v840_v23  }
  0x30   : > { %875 = vperm.xlu2 %2140, %v841_v24  }
  0x33   : > { %1975 = vmatmul.msk.f32.gmra.mxu2 %vm411_vm1, %v356_v21  ;;  %1985 = vmatmul.msk.f32.gmra.mxu3 %vm411_vm1, %v357_v25 }
  0x36   : > { %880 = vperm.xlu0 %2138, %v842_v26   ;;  %597 = vperm.xlu1 %2139, %v554_v27   ;;  %v2107_v26 = vld [vmem:[%s3215_s3 + $0x8] sm:$0xff]  ;;  %v2100_v27 = vld [vmem:[%s3217_s5 + $0x10] sm:$0xff] }
  0x38   : > { %602 = vperm.xlu2 %2140, %v555_v28   ;;  %v2108_v28 = vld [vmem:[%s3215_s3 + $0x10] sm:$0xff] }
  0x3b   : > { %1976 = vmatmul.msk.f32.gmra.mxu2 %vm411_vm1, %v357_v25  ;;  %1986 = vmatmul.msk.f32.gmra.mxu3 %vm411_vm1, %v358_v29  ;;  %v2099_v25 = vld [vmem:[%s3217_s5 + $0x8] sm:$0xff] }
  0x3e   : > { %587 = vperm.xlu0 %2138, %v552_v30   ;;  %592 = vperm.xlu1 %2139, %v553_v31   ;;  %v2109_v30 = vld [vmem:[%s3215_s3 + $0x18] sm:$0xff]  ;;  %v2102_v31 = vld [vmem:[%s3217_s5 + $0x20] sm:$0xff] }
  0x40   : > { %577 = vperm.xlu2 %2140, %v550_v32   ;;  %v2103_v32 = vld [vmem:[%s3217_s5 + $0x28] sm:$0xff] }
  0x43   : > { %1977 = vmatmul.msk.f32.gmra.mxu2 %vm411_vm1, %v358_v29  ;;  %v2101_v29 = vld [vmem:[%s3217_s5 + $0x18] sm:$0xff] }
  0x46   : > { %582 = vperm.xlu0 %2138, %v551_v33   ;;  %567 = vperm.xlu1 %2139, %v548_v34  }
  0x48   : > { %572 = vperm.xlu2 %2140, %v549_v35  }
  0x50   : > { %607 = vperm.xlu2 %2140, %v556_v36  }
  0x58   : > { %612 = vperm.xlu2 %2140, %v557_v37  }
  0x60   : > { %617 = vperm.xlu2 %2140, %v558_v38  }
  0x6a   : > { %v380_v51 = vpop.permute.xlu2 %379 }
  0x72   : > { %v385_v62 = vpop.permute.xlu2 %384 }
  0x7a   : > { %v846_v33 = vpop.permute.xlu2 %845 }
  0x80   : > { %v400_v46 = vpop.permute.xlu0 %399  ;;  %v390_v47 = vpop.permute.xlu1 %389 }
  0x88   : > { %v405_v52 = vpop.permute.xlu0 %404  ;;  %v395_v53 = vpop.permute.xlu1 %394 }
  0x90   : > { %v370_v7 = vpop.permute.xlu0 %369  ;;  %v375_v8 = vpop.permute.xlu1 %374 }
  0x98   : > { %v851_v37 = vpop.permute.xlu0 %850 }
  0x9a   : > { %v499_v43 = vpop.f32.mrf.mxu1  ;;  %v458_v2 = vpop.f32.mrf.mxu0 }
  0x9b   : > { %v2516_v10 = vadd.f32 %v499_v43, %v370_v7  ;;  %v2538_v21 = vadd.f32 %v458_v2, %v370_v7 }
  0x9d   : > { %3264 = vst [vmem:[#allocation11_spill] sm:$0xff] %v2516_v10 }
  0x9e   : > { %v464_v39 = vpop.f32.mrf.mxu2  ;;  %v508_v40 = vpop.f32.mrf.mxu3  ;;  %3269 = vst [vmem:[#allocation16_spill] sm:$0xff] %v2538_v21 }
  0x9f   : > { %v2502_v63 = vadd.f32 %v508_v40, %v385_v62  ;;  %v2533_v19 = vadd.f32 %v464_v39, %v380_v51 }
  0xa1   : > { %3259 = vst [vmem:[#allocation6_spill] sm:$0xff] %v2502_v63 }
  0xa2   : > { %v502_v48 = vpop.f32.mrf.mxu1  ;;  %v461_v17 = vpop.f32.mrf.mxu0  ;;  %3268 = vst [vmem:[#allocation15_spill] sm:$0xff] %v2533_v19 }
  0xa3   : > { %v2518_v11 = vadd.f32 %v502_v48, %v375_v8  ;;  %v2540_v22 = vadd.f32 %v461_v17, %v375_v8 }
  0xa5   : > { %3265 = vst [vmem:[#allocation12_spill] sm:$0xff] %v2518_v11  ;;  %v541_v16 = vpack.c.bf16 %v2518_v11, %v2516_v10  ;;  %v540_v24 = vpack.c.bf16 %v2540_v22, %v2538_v21 }
  0xa6   : > { %v467_v41 = vpop.f32.mrf.mxu2  ;;  %v511_v42 = vpop.f32.mrf.mxu3  ;;  %3270 = vst [vmem:[#allocation17_spill] sm:$0xff] %v2540_v22 }
  0xa7   : > { %v2494_v57 = vadd.f32 %v511_v42, %v390_v47  ;;  %v2524_v14 = vadd.f32 %v467_v41, %v385_v62  ;;  %v866_v62 = vpop.permute.xlu0 %865 }
  0xa9   : > { %3256 = vst [vmem:[#allocation3_spill] sm:$0xff] %v2494_v57  ;;  %v542_v23 = vpack.c.bf16 %v2524_v14, %v2533_v19 }
  0xaa   : > { %v505_v60 = vpop.f32.mrf.mxu1  ;;  %3267 = vst [vmem:[#allocation14_spill] sm:$0xff] %v2524_v14 }
  0xab   : > { %v2504_v0 = vadd.f32 %v505_v60, %v380_v51  ;;  %v861_v51 = vpop.permute.xlu2 %860 }
  0xad   : > { %3260 = vst [vmem:[#allocation7_spill] sm:$0xff] %v2504_v0  ;;  %v543_v6 = vpack.c.bf16 %v2502_v63, %v2504_v0 }
  0xae   : > { %v470_v44 = vpop.f32.mrf.mxu2  ;;  %v514_v45 = vpop.f32.mrf.mxu3 }
  0xaf   : > { %v2496_v58 = vadd.f32 %v514_v45, %v395_v53  ;;  %v2522_v13 = vadd.f32 %v470_v44, %v390_v47  ;;  %v856_v44 = vpop.permute.xlu1 %855 }
  0xb1   : > { %3257 = vst [vmem:[#allocation4_spill] sm:$0xff] %v2496_v58  ;;  %v545_v1 = vpack.c.bf16 %v2496_v58, %v2494_v57 }
  0xb2   : > { %3266 = vst [vmem:[#allocation13_spill] sm:$0xff] %v2522_v13 }
  0xb6   : > { %v473_v49 = vpop.f32.mrf.mxu2  ;;  %v517_v50 = vpop.f32.mrf.mxu3 }
  0xb7   : > { %v2492_v54 = vadd.f32 %v517_v50, %v400_v46  ;;  %v2514_v9 = vadd.f32 %v473_v49, %v395_v53 }
  0xb9   : > { %3255 = vst [vmem:[#allocation2_spill] sm:$0xff] %v2492_v54  ;;  %v544_v15 = vpack.c.bf16 %v2514_v9, %v2522_v13 }
  0xba   : > { %3263 = vst [vmem:[#allocation10_spill] sm:$0xff] %v2514_v9 }
  0xbe   : > { %v476_v55 = vpop.f32.mrf.mxu2  ;;  %v520_v56 = vpop.f32.mrf.mxu3 }
  0xbf   : > { %v2498_v59 = vadd.f32 %v520_v56, %v405_v52  ;;  %v2508_v4 = vadd.f32 %v476_v55, %v400_v46 }
  0xc1   : > { %3258 = vst [vmem:[#allocation5_spill] sm:$0xff] %v2498_v59  ;;  %v547_v61 = vpack.c.bf16 %v2498_v59, %v2492_v54 }
  0xc2   : > { %3261 = vst [vmem:[#allocation8_spill] sm:$0xff] %v2508_v4 }
  0xc3   : > { %778 = vmatpush.bf16.msrb.mxu3 %v547_v61  ;;  %948 = vmatpush.bf16.msrb.mxu1 %v547_v61 }
  0xc6   : > { %v479_v3 = vpop.f32.mrf.mxu2 }
  0xc7   : > { %v2510_v5 = vadd.f32 %v479_v3, %v405_v52  ;;  %779 = vmatpush.bf16.msrb.mxu3 %v545_v1  ;;  %949 = vmatpush.bf16.msrb.mxu1 %v545_v1 }
  0xc9   : > { %3262 = vst [vmem:[#allocation9_spill] sm:$0xff] %v2510_v5  ;;  %v546_v12 = vpack.c.bf16 %v2510_v5, %v2508_v4 }
  0xcb   : > { %725 = vmatpush.bf16.msrb.mxu2 %v546_v12  ;;  %780 = vmatpush.bf16.msrb.mxu3 %v543_v6 }
  0xcc   : > { %919 = vmatpush.bf16.msrb.mxu0 %v546_v12  ;;  %950 = vmatpush.bf16.msrb.mxu1 %v543_v6  ;;  %v876_v12 = vpop.permute.xlu2 %875 }
  0xcf   : > { %726 = vmatpush.bf16.msrb.mxu2 %v544_v15  ;;  %781 = vmatpush.bf16.msrb.mxu3 %v541_v16 }
  0xd0   : > { %920 = vmatpush.bf16.msrb.mxu0 %v544_v15  ;;  %951 = vmatpush.bf16.msrb.mxu1 %v541_v16  ;;  %v871_v15 = vpop.permute.xlu1 %870 }
  0xd2   : > { %2028 = vmatmul.msk.bf16.vlgmr.msrb.gmra.mxu3 %vm693_vm2, %v2098_v18 }
  0xd3   : > { %2057 = vmatmul.msk.bf16.vlgmr.msrb.gmra.mxu1 %vm693_vm2, %v2106_v20  ;;  %727 = vmatpush.bf16.msrb.mxu2 %v542_v23 }
  0xd4   : > { %921 = vmatpush.bf16.msrb.mxu0 %v542_v23 }
  0xd7   : > { %728 = vmatpush.bf16.msrb.mxu2 %v540_v24 }
  0xd8   : > { %922 = vmatpush.bf16.msrb.mxu0 %v540_v24 }
  0xda   : > { %2019 = vmatmul.msk.bf16.vlgmr.msrb.gmra.mxu2 %vm693_vm2, %v2098_v18 }
  0xdb   : > { %2053 = vmatmul.msk.bf16.vlgmr.msrb.gmra.mxu0 %vm693_vm2, %v2106_v20 }
  0xe2   : > { %2029 = vmatmul.msk.bf16.gmra.mxu3 %vm693_vm2, %v2099_v25 }
  0xe3   : > { %2058 = vmatmul.msk.bf16.gmra.mxu1 %vm693_vm2, %v2107_v26 }
  0xea   : > { %2020 = vmatmul.msk.bf16.gmra.mxu2 %vm693_vm2, %v2099_v25  ;;  %v881_v25 = vpop.permute.xlu0 %880 }
  0xeb   : > { %2054 = vmatmul.msk.bf16.gmra.mxu0 %vm693_vm2, %v2107_v26 }
  0xf2   : > { %2030 = vmatmul.msk.bf16.gmra.mxu3 %vm693_vm2, %v2100_v27 }
  0xf3   : > { %2059 = vmatmul.msk.bf16.gmra.mxu1 %vm693_vm2, %v2108_v28 }
  0xfa   : > { %2021 = vmatmul.msk.bf16.gmra.mxu2 %vm693_vm2, %v2100_v27 }
  0xfb   : > { %2055 = vmatmul.msk.bf16.gmra.mxu0 %vm693_vm2, %v2108_v28 }
 0x102   : > { %2031 = vmatmul.msk.bf16.gmra.mxu3 %vm693_vm2, %v2101_v29 }
 0x103   : > { %2060 = vmatmul.msk.bf16.gmra.mxu1 %vm693_vm2, %v2109_v30 }
 0x10a   : > { %2022 = vmatmul.msk.bf16.gmra.mxu2 %vm693_vm2, %v2101_v29 }
 0x10b   : > { %2056 = vmatmul.msk.bf16.gmra.mxu0 %vm693_vm2, %v2109_v30  ;;  %v603_v30 = vpop.permute.xlu2 %602 }
 0x112   : > { %2032 = vmatmul.msk.bf16.gmra.mxu3 %vm693_vm2, %v2102_v31 }
 0x11a   : > { %2023 = vmatmul.msk.bf16.gmra.mxu2 %vm693_vm2, %v2102_v31  ;;  %v598_v31 = vpop.permute.xlu1 %597 }
 0x122   : > { %2033 = vmatmul.msk.bf16.gmra.mxu3 %vm693_vm2, %v2103_v32 }
 0x12a   : > { %2024 = vmatmul.msk.bf16.gmra.mxu2 %vm693_vm2, %v2103_v32 }
 0x150   : > { %v953_v34 = vpop.f32.mrf.mxu1 }
 0x151   : > { %v954_v35 = vadd.f32 %v953_v34, %v846_v33 }
 0x153   : > { %1005 = vxpose.xlu1.b32.start [1/8] (short) %v954_v35, 128 }
 0x155   : > { %v2590_v36 = vpop.f32.mrf.mxu3 }
 0x158   : > { %v924_v38 = vpop.f32.mrf.mxu0  ;;  %v955_v39 = vpop.f32.mrf.mxu1 }
 0x159   : > { %v925_v40 = vadd.f32 %v924_v38, %v846_v33  ;;  %v956_v41 = vadd.f32 %v955_v39, %v851_v37 }
 0x15b   : > { %1006 = vxpose.xlu1.b32.cont [2/8] (short) %v956_v41, 128  ;;  %973 = vxpose.xlu0.b32.start [1/8] (short) %v925_v40, 128  ;;  %v578_v40 = vpop.permute.xlu2 %577 }
 0x15d   : > { %v2592_v42 = vpop.f32.mrf.mxu2  ;;  %v2594_v43 = vpop.f32.mrf.mxu3 }
 0x160   : > { %v926_v45 = vpop.f32.mrf.mxu0  ;;  %v958_v46 = vpop.f32.mrf.mxu1 }
 0x161   : > { %v927_v47 = vadd.f32 %v926_v45, %v851_v37  ;;  %v959_v48 = vadd.f32 %v958_v46, %v856_v44  ;;  %v588_v37 = vpop.permute.xlu0 %587 }
 0x163   : > { %1007 = vxpose.xlu1.b32.cont [3/8] (short) %v959_v48, 128  ;;  %974 = vxpose.xlu0.b32.cont [2/8] (short) %v927_v47, 128  ;;  %v593_v47 = vpop.permute.xlu1 %592 }
 0x165   : > { %v2596_v49 = vpop.f32.mrf.mxu2  ;;  %v2598_v50 = vpop.f32.mrf.mxu3 }
 0x168   : > { %v929_v52 = vpop.f32.mrf.mxu0  ;;  %v960_v53 = vpop.f32.mrf.mxu1 }
 0x169   : > { %v930_v55 = vadd.f32 %v929_v52, %v856_v44  ;;  %v961_v56 = vadd.f32 %v960_v53, %v861_v51 }
 0x16b   : > { %1008 = vxpose.xlu1.b32.cont [4/8] (short) %v961_v56, 128  ;;  %975 = vxpose.xlu0.b32.cont [3/8] (short) %v930_v55, 128  ;;  %v583_v56 = vpop.permute.xlu0 %582 }
 0x16d   : > { %v2600_v60 = vpop.f32.mrf.mxu2  ;;  %v790_v61 = vpop.f32.mrf.mxu3 }
 0x170   : > { %v931_v1 = vpop.f32.mrf.mxu0  ;;  %v963_v2 = vpop.f32.mrf.mxu1 }
 0x171   : > { %v932_v3 = vadd.f32 %v931_v1, %v861_v51  ;;  %v964_v6 = vadd.f32 %v963_v2, %v866_v62 }
 0x173   : > { %1009 = vxpose.xlu1.b32.cont [5/8] (short) %v964_v6, 128  ;;  %976 = vxpose.xlu0.b32.cont [4/8] (short) %v932_v3, 128  ;;  %v789_v3 = vadd.f32 %v2598_v50, %v578_v40  ;;  %v736_v50 = vadd.f32 %v2600_v60, %v578_v40 }
 0x175   : > { %v737_v7 = vpop.f32.mrf.mxu2  ;;  %v793_v8 = vpop.f32.mrf.mxu3 }
 0x176   : > { %v794_v55 = vadd.f32 %v793_v8, %v588_v37 }
 0x178   : > { %v934_v16 = vpop.f32.mrf.mxu0  ;;  %v965_v17 = vpop.f32.mrf.mxu1 }
 0x179   : > { %v935_v18 = vadd.f32 %v934_v16, %v866_v62  ;;  %v966_v20 = vadd.f32 %v965_v17, %v871_v15  ;;  %v791_v62 = vadd.f32 %v790_v61, %v583_v56 }
 0x17b   : > { %1010 = vxpose.xlu1.b32.cont [6/8] (short) %v966_v20, 128  ;;  %977 = vxpose.xlu0.b32.cont [5/8] (short) %v935_v18, 128  ;;  %v1056_v17 = vpack.c.bf16 %v791_v62, %v789_v3 }
 0x17d   : > { %v740_v23 = vpop.f32.mrf.mxu2  ;;  %v795_v24 = vpop.f32.mrf.mxu3 }
 0x17e   : > { %v796_v48 = vadd.f32 %v795_v24, %v593_v47  ;;  %v568_v24 = vpop.permute.xlu1 %567 }
 0x17f   : > { %v784_v8 = vadd.f32 %v2590_v36, %v568_v24 }
 0x180   : > { %v936_v26 = vpop.f32.mrf.mxu0  ;;  %v968_v27 = vpop.f32.mrf.mxu1  ;;  %v1058_v1 = vpack.c.bf16 %v796_v48, %v794_v55 }
 0x181   : > { %v937_v28 = vadd.f32 %v936_v26, %v871_v15  ;;  %v969_v29 = vadd.f32 %v968_v27, %v876_v12  ;;  %v573_v15 = vpop.permute.xlu2 %572  ;;  %v738_v26 = vadd.f32 %v737_v7, %v583_v56 }
 0x182   : > { %v786_v16 = vadd.f32 %v2594_v43, %v573_v15  ;;  %v731_v43 = vadd.f32 %v2592_v42, %v568_v24  ;;  %v2104_v24 = vld [vmem:[%s3217_s5 + $0x30] sm:$0xff] }
 0x183   : > { %1011 = vxpose.xlu1.b32.cont [7/8] (short) %v969_v29, 128  ;;  %978 = vxpose.xlu0.b32.cont [6/8] (short) %v937_v28, 128  ;;  %v733_v28 = vadd.f32 %v2596_v49, %v573_v15  ;;  %v1055_v29 = vpack.c.bf16 %v738_v26, %v736_v50 }
 0x184   : > { %v1054_v61 = vpack.c.bf16 %v786_v16, %v784_v8  ;;  %2025 = vmatmul.msk.bf16.gmra.mxu2 %vm693_vm2, %v2104_v24  ;;  %2034 = vmatmul.msk.bf16.gmra.mxu3 %vm693_vm2, %v2104_v24 }
 0x185   : > { %v742_v32 = vpop.f32.mrf.mxu2  ;;  %v798_v33 = vpop.f32.mrf.mxu3 }
 0x186   : > { %v799_v45 = vadd.f32 %v798_v33, %v598_v31  ;;  %v743_v18 = vadd.f32 %v742_v32, %v593_v47 }
 0x188   : > { %v939_v34 = vpop.f32.mrf.mxu0  ;;  %v970_v35 = vpop.f32.mrf.mxu1 }
 0x189   : > { %v940_v38 = vadd.f32 %v939_v34, %v876_v12  ;;  %v971_v39 = vadd.f32 %v970_v35, %v881_v25 }
 0x18b   : > { %1012 = vxpose.xlu1.b32.end [8/8] (short) %v971_v39, 128  ;;  %979 = vxpose.xlu0.b32.cont [7/8] (short) %v940_v38, 128 }
 0x18d   : > { %v745_v41 = vpop.f32.mrf.mxu2  ;;  %v800_v44 = vpop.f32.mrf.mxu3 }
 0x18e   : > { %v801_v46 = vadd.f32 %v800_v44, %v603_v30  ;;  %v746_v6 = vadd.f32 %v745_v41, %v598_v31 }
 0x190   : > { %v1060_v51 = vpack.c.bf16 %v801_v46, %v799_v45  ;;  %v941_v52 = vpop.f32.mrf.mxu0 }
 0x191   : > { %v942_v53 = vadd.f32 %v941_v52, %v881_v25  ;;  %v741_v25 = vadd.f32 %v740_v23, %v588_v37 }
 0x192   : > { %1202 = vmatpush.bf16.msra.mxu1 %v1060_v51 }
 0x193   : > { %980 = vxpose.xlu0.b32.end [8/8] (short) %v942_v53, 128  ;;  %v1057_v27 = vpack.c.bf16 %v743_v18, %v741_v25 }
 0x195   : > { %v747_v2 = vpop.f32.mrf.mxu2 }
 0x196   : > { %v748_v12 = vadd.f32 %v747_v2, %v603_v30  ;;  %1203 = vmatpush.bf16.msra.mxu1 %v1058_v1  ;;  %v1053_v30 = vpack.c.bf16 %v733_v28, %v731_v43 }
 0x198   : > { %v1059_v20 = vpack.c.bf16 %v748_v12, %v746_v6 }
 0x19a   : > { %1113 = vmatpush.bf16.msra.mxu0 %v1059_v20  ;;  %1204 = vmatpush.bf16.msra.mxu1 %v1056_v17 }
 0x19e   : > { %1114 = vmatpush.bf16.msra.mxu0 %v1057_v27  ;;  %1205 = vmatpush.bf16.msra.mxu1 %v1054_v61 }
 0x1a2   : > { %1115 = vmatpush.bf16.msra.mxu0 %v1055_v29 }
 0x1a6   : > { %1116 = vmatpush.bf16.msra.mxu0 %v1053_v30 }
 0x1f7   : > { %v1021_v46 = vpop.trf.xlu1 }
 0x1ff   : > { %v989_v31 = vpop.trf.xlu0  ;;  %v1022_v52 = vpop.trf.xlu1 }
 0x200   : > { %v1045_v12 = vpack.c.bf16 %v1022_v52, %v1021_v46 }
 0x207   : > { %v990_v36 = vpop.trf.xlu0  ;;  %v1023_v55 = vpop.trf.xlu1 }
 0x208   : > { %v1037_v23 = vpack.c.bf16 %v990_v36, %v989_v31 }
 0x20a   : > { %2061 = vmatmul.msk.bf16.vlgmr.msra.gmra.mxu0 %vm693_vm2, %v1037_v23  ;;  %2077 = vmatmul.msk.bf16.vlgmr.msra.gmra.mxu1 %vm693_vm2, %v1037_v23 }
 0x20f   : > { %v991_v7 = vpop.trf.xlu0  ;;  %v1024_v1 = vpop.trf.xlu1 }
 0x210   : > { %v1046_v61 = vpack.c.bf16 %v1024_v1, %v1023_v55 }
 0x217   : > { %v992_v32 = vpop.trf.xlu0  ;;  %v1025_v2 = vpop.trf.xlu1 }
 0x218   : > { %v1038_v60 = vpack.c.bf16 %v992_v32, %v991_v7 }
 0x21a   : > { %2062 = vmatmul.msk.bf16.gmra.mxu0 %vm693_vm2, %v1038_v60  ;;  %2078 = vmatmul.msk.bf16.gmra.mxu1 %vm693_vm2, %v1038_v60 }
 0x21f   : > { %v993_v49 = vpop.trf.xlu0  ;;  %v1026_v20 = vpop.trf.xlu1 }
 0x220   : > { %v1047_v36 = vpack.c.bf16 %v1026_v20, %v1025_v2 }
 0x227   : > { %v994_v33 = vpop.trf.xlu0  ;;  %v1027_v27 = vpop.trf.xlu1 }
 0x228   : > { %v1039_v42 = vpack.c.bf16 %v994_v33, %v993_v49 }
 0x22a   : > { %2063 = vmatmul.msk.bf16.gmra.mxu0 %vm693_vm2, %v1039_v42  ;;  %2079 = vmatmul.msk.bf16.gmra.mxu1 %vm693_vm2, %v1039_v42 }
 0x22f   : > { %v995_v34 = vpop.trf.xlu0  ;;  %v1028_v43 = vpop.trf.xlu1 }
 0x237   : > { %v996_v35 = vpop.trf.xlu0  ;;  %v1029_v7 = vpop.trf.xlu1 }
 0x238   : > { %v1040_v37 = vpack.c.bf16 %v996_v35, %v995_v34  ;;  %v1048_v34 = vpack.c.bf16 %v1028_v43, %v1027_v27 }
 0x23a   : > { %2064 = vmatmul.msk.bf16.gmra.mxu0 %vm693_vm2, %v1040_v37  ;;  %2080 = vmatmul.msk.bf16.gmra.mxu1 %vm693_vm2, %v1040_v37 }
 0x23f   : > { %v997_v38 = vpop.trf.xlu0  ;;  %v1030_v37 = vpop.trf.xlu1 }
 0x240   : > { %v1049_v46 = vpack.c.bf16 %v1030_v37, %v1029_v7 }
 0x247   : > { %v998_v39 = vpop.trf.xlu0 }
 0x248   : > { %v1041_v40 = vpack.c.bf16 %v998_v39, %v997_v38 }
 0x24a   : > { %2065 = vmatmul.msk.bf16.gmra.mxu0 %vm693_vm2, %v1041_v40  ;;  %2081 = vmatmul.msk.bf16.gmra.mxu1 %vm693_vm2, %v1041_v40 }
 0x24f   : > { %v999_v41 = vpop.trf.xlu0 }
 0x257   : > { %v1000_v44 = vpop.trf.xlu0 }
 0x258   : > { %v1042_v45 = vpack.c.bf16 %v1000_v44, %v999_v41  ;;  %v1031_v41 = vpop.trf.xlu1 }
 0x25a   : > { %2066 = vmatmul.msk.bf16.gmra.mxu0 %vm693_vm2, %v1042_v45  ;;  %2082 = vmatmul.msk.bf16.gmra.mxu1 %vm693_vm2, %v1042_v45 }
 0x25f   : > { %v1001_v47 = vpop.trf.xlu0 }
 0x260   : > { %v1032_v52 = vpop.trf.xlu1 }
 0x267   : > { %v1002_v48 = vpop.trf.xlu0 }
 0x268   : > { %v1043_v51 = vpack.c.bf16 %v1002_v48, %v1001_v47  ;;  %v560_v48 = vld [vmem:[%s3218_s6 + $0x60] sm:$0xff] }
 0x26a   : > { %2067 = vmatmul.msk.bf16.gmra.mxu0 %vm693_vm2, %v1043_v51  ;;  %2083 = vmatmul.msk.bf16.gmra.mxu1 %vm693_vm2, %v1043_v51  ;;  %v561_v51 = vld [vmem:[%s3218_s6 + $0x68] sm:$0xff] }
 0x26f   : > { %v1003_v53 = vpop.trf.xlu0 }
 0x277   : > { %v1004_v56 = vpop.trf.xlu0 }
 0x278   : > { %v1044_v62 = vpack.c.bf16 %v1004_v56, %v1003_v53 }
 0x27a   : > { %2068 = vmatmul.msk.bf16.gmra.mxu0 %vm693_vm2, %v1044_v62  ;;  %2084 = vmatmul.msk.bf16.gmra.mxu1 %vm693_vm2, %v1044_v62  ;;  %v1033_v62 = vpop.trf.xlu1 }
 0x287   : > { %v2624_v3 = vpop.f32.mrf.mxu0  ;;  %v2626_v6 = vpop.f32.mrf.mxu1 }
 0x288   : > { %v1287_v15 = vmax.f32 %v2624_v3, %v2626_v6 }
 0x28a   : > { %2069 = vmatmul.msk.bf16.gmra.mxu0 %vm693_vm2, %v1045_v12  ;;  %2085 = vmatmul.msk.bf16.gmra.mxu1 %vm693_vm2, %v1045_v12  ;;  %v1050_v12 = vpack.c.bf16 %v1032_v52, %v1031_v41 }
 0x28b   : > { %1288 = vmax.xlane.f32.xlu2 %v1287_v15 }
 0x28f   : > { %v2632_v16 = vpop.f32.mrf.mxu0  ;;  %v2634_v17 = vpop.f32.mrf.mxu1 }
 0x290   : > { %v1290_v18 = vmax.f32 %v2632_v16, %v2634_v17 }
 0x293   : > { %1291 = vmax.xlane.f32.xlu2 %v1290_v18 }
 0x297   : > { %v2643_v8 = vpop.f32.mrf.mxu0  ;;  %v2645_v25 = vpop.f32.mrf.mxu1 }
 0x298   : > { %v1293_v26 = vmax.f32 %v2643_v8, %v2645_v25 }
 0x29a   : > { %2070 = vmatmul.msk.bf16.gmra.mxu0 %vm693_vm2, %v1046_v61  ;;  %2086 = vmatmul.msk.bf16.gmra.mxu1 %vm693_vm2, %v1046_v61  ;;  %v1034_v61 = vpop.trf.xlu1 }
 0x29b   : > { %1294 = vmax.xlane.f32.xlu2 %v1293_v26  ;;  %v2719_v26 = vpop.permute.xlu2 %607  ;;  %v1051_v43 = vpack.c.bf16 %v1034_v61, %v1033_v62 }
 0x29f   : > { %v2651_v50 = vpop.f32.mrf.mxu0  ;;  %v2653_v28 = vpop.f32.mrf.mxu1 }
 0x2a0   : > { %v1296_v29 = vmax.f32 %v2651_v50, %v2653_v28 }
 0x2a3   : > { %1297 = vmax.xlane.f32.xlu2 %v1296_v29  ;;  %v2729_v7 = vpop.permute.xlu2 %612 }
 0x2a7   : > { %v2657_v30 = vpop.f32.mrf.mxu0  ;;  %v2659_v31 = vpop.f32.mrf.mxu1 }
 0x2a8   : > { %v1299_v23 = vmax.f32 %v2657_v30, %v2659_v31 }
 0x2aa   : > { %2071 = vmatmul.msk.bf16.gmra.mxu0 %vm693_vm2, %v1047_v36  ;;  %2087 = vmatmul.msk.bf16.gmra.mxu1 %vm693_vm2, %v1047_v36 }
 0x2ab   : > { %1300 = vmax.xlane.f32.xlu2 %v1299_v23  ;;  %v1035_v23 = vpop.trf.xlu1 }
 0x2af   : > { %v2665_v32 = vpop.f32.mrf.mxu0  ;;  %v2667_v60 = vpop.f32.mrf.mxu1 }
 0x2b0   : > { %v1302_v49 = vmax.f32 %v2665_v32, %v2667_v60 }
 0x2b2   : > { %1303 = vmax.xlane.f32.xlu1 %v1302_v49 }
 0x2b3   : > { %v1036_v37 = vpop.trf.xlu1 }
 0x2b7   : > { %v2671_v33 = vpop.f32.mrf.mxu0  ;;  %v2673_v42 = vpop.f32.mrf.mxu1 }
 0x2b8   : > { %v1305_v35 = vmax.f32 %v2671_v33, %v2673_v42 }
 0x2ba   : > { %2072 = vmatmul.msk.bf16.gmra.mxu0 %vm693_vm2, %v1048_v34  ;;  %2088 = vmatmul.msk.bf16.gmra.mxu1 %vm693_vm2, %v1048_v34 }
 0x2bb   : > { %1306 = vmax.xlane.f32.xlu0 %v1305_v35 }
 0x2bf   : > { %v2679_v38 = vpop.f32.mrf.mxu0  ;;  %v2681_v39 = vpop.f32.mrf.mxu1 }
 0x2c0   : > { %v1308_v40 = vmax.f32 %v2679_v38, %v2681_v39 }
 0x2c2   : > { %1309 = vmax.xlane.f32.xlu2 %v1308_v40  ;;  %v2737_v40 = vpop.permute.xlu2 %617 }
 0x2c7   : > { %v2685_v44 = vpop.f32.mrf.mxu0  ;;  %v2687_v45 = vpop.f32.mrf.mxu1 }
 0x2c8   : > { %v1311_v47 = vmax.f32 %v2685_v44, %v2687_v45 }
 0x2ca   : > { %2073 = vmatmul.msk.bf16.gmra.mxu0 %vm693_vm2, %v1049_v46  ;;  %2089 = vmatmul.msk.bf16.gmra.mxu1 %vm693_vm2, %v1049_v46 }
 0x2cb   : > { %1312 = vmax.xlane.f32.xlu2 %v1311_v47  ;;  %627 = vperm.xlu1 %2139, %v560_v48   ;;  %v1052_v47 = vpack.c.bf16 %v1036_v37, %v1035_v23 }
 0x2cf   : > { %632 = vperm.xlu0 %2138, %v561_v51   ;;  %v2699_v53 = vpop.f32.mrf.mxu0  ;;  %v2701_v55 = vpop.f32.mrf.mxu1 }
 0x2d0   : > { %v1314_v56 = vmax.f32 %v2699_v53, %v2701_v55 }
 0x2d3   : > { %1315 = vmax.xlane.f32.xlu2 %v1314_v56 }
 0x2d7   : > { %v2705_v1 = vpop.f32.mrf.mxu0  ;;  %v2707_v2 = vpop.f32.mrf.mxu1 }
 0x2d8   : > { %v1317_v15 = vmax.f32 %v2705_v1, %v2707_v2 }
 0x2da   : > { %2074 = vmatmul.msk.bf16.gmra.mxu0 %vm693_vm2, %v1050_v12  ;;  %2090 = vmatmul.msk.bf16.gmra.mxu1 %vm693_vm2, %v1050_v12 }
 0x2db   : > { %1318 = vmax.xlane.f32.xlu2 %v1317_v15 }
 0x2df   : > { %v2713_v18 = vpop.f32.mrf.mxu0  ;;  %v2715_v20 = vpop.f32.mrf.mxu1 }
 0x2e0   : > { %v1320_v24 = vmax.f32 %v2713_v18, %v2715_v20 }
 0x2e3   : > { %1321 = vmax.xlane.f32.xlu2 %v1320_v24 }
 0x2e7   : > { %v2721_v27 = vpop.f32.mrf.mxu0  ;;  %v2723_v29 = vpop.f32.mrf.mxu1 }
 0x2e8   : > { %v1323_v36 = vmax.f32 %v2721_v27, %v2723_v29 }
 0x2ea   : > { %2075 = vmatmul.msk.bf16.gmra.mxu0 %vm693_vm2, %v1051_v43  ;;  %2091 = vmatmul.msk.bf16.gmra.mxu1 %vm693_vm2, %v1051_v43 }
 0x2eb   : > { %1324 = vmax.xlane.f32.xlu2 %v1323_v36 }
 0x2ef   : > { %v2731_v49 = vpop.f32.mrf.mxu0  ;;  %v2733_v34 = vpop.f32.mrf.mxu1 }
 0x2f0   : > { %v1326_v35 = vmax.f32 %v2731_v49, %v2733_v34 }
 0x2f3   : > { %1327 = vmax.xlane.f32.xlu2 %v1326_v35 }
 0x2f7   : > { %v2739_v41 = vpop.f32.mrf.mxu0  ;;  %v2741_v46 = vpop.f32.mrf.mxu1 }
 0x2f8   : > { %v1329_v48 = vmax.f32 %v2739_v41, %v2741_v46 }
 0x2fa   : > { %2076 = vmatmul.msk.bf16.gmra.mxu0 %vm693_vm2, %v1052_v47  ;;  %2092 = vmatmul.msk.bf16.gmra.mxu1 %vm693_vm2, %v1052_v47 }
 0x2fb   : > { %1330 = vmax.xlane.f32.xlu2 %v1329_v48 }
 0x2fe   : > { %v1289_v51 = vpop.xlane.xlu2 %1288 }
 0x2ff   : > { %v2747_v52 = vpop.f32.mrf.mxu0  ;;  %v2749_v56 = vpop.f32.mrf.mxu1  ;;  %v1383_v12 = vsub.f32 %v2624_v3, %v1289_v51  ;;  %v1384_v15 = vsub.f32 %v2626_v6, %v1289_v51 }
 0x300   : > { %v1332_v62 = vmax.f32 %v2747_v52, %v2749_v56 }
 0x301   : > { %v1447_v24 = vmul.f32 1.442695, %v1383_v12  ;;  %v1449_v61 = vmul.f32 1.442695, %v1384_v15 }
 0x303   : > { %1333 = vmax.xlane.f32.xlu2 %v1332_v62  ;;  %2141 = vpow2.f32 %v1447_v24 }
 0x304   : > { %2143 = vpow2.f32 %v1449_v61 }
 0x306   : > { %v1292_v43 = vpop.xlane.xlu2 %1291 }
 0x307   : > { %v1385_v36 = vsub.f32 %v2632_v16, %v1292_v43  ;;  %v1386_v23 = vsub.f32 %v2634_v17, %v1292_v43  ;;  %v2757_v35 = vpop.f32.mrf.mxu0  ;;  %v2759_v37 = vpop.f32.mrf.mxu1 }
 0x309   : > { %v1451_v47 = vmul.f32 1.442695, %v1385_v36  ;;  %v1453_v48 = vmul.f32 1.442695, %v1386_v23  ;;  %v2761_v6 = vpop.eup %2141 }
 0x30a   : > { %v2767_v16 = vpop.eup %2143 }
 0x30b   : > { %2145 = vpow2.f32 %v1451_v47 }
 0x30c   : > { %2147 = vpow2.f32 %v1453_v48 }
 0x30e   : > { %v1295_v3 = vpop.xlane.xlu2 %1294 }
 0x30f   : > { %v2763_v51 = vpop.f32.mrf.mxu0  ;;  %v2765_v62 = vpop.f32.mrf.mxu1  ;;  %v1387_v12 = vsub.f32 %v2643_v8, %v1295_v3  ;;  %v1388_v24 = vsub.f32 %v2645_v25, %v1295_v3  ;;  %v559_v25 = vld [vmem:[%s3218_s6 + $0x58] sm:$0xff] }
 0x310   : > { %3271 = vst [vmem:[#allocation18_spill] sm:$0xff] %v2763_v51 }
 0x311   : > { %3272 = vst [vmem:[#allocation19_spill] sm:$0xff] %v2765_v62  ;;  %v2769_v17 = vpop.eup %2145  ;;  %v1455_v36 = vmul.f32 1.442695, %v1387_v12  ;;  %v1457_v23 = vmul.f32 1.442695, %v1388_v24 }
 0x312   : > { %v2772_v15 = vpop.eup %2147 }
 0x313   : > { %2149 = vpow2.f32 %v1455_v36 }
 0x314   : > { %2151 = vpow2.f32 %v1457_v23 }
 0x316   : > { %v1298_v47 = vpop.xlane.xlu2 %1297 }
 0x317   : > { %v1389_v48 = vsub.f32 %v2651_v50, %v1298_v47  ;;  %v1390_v59 = vsub.f32 %v2653_v28, %v1298_v47  ;;  %v2781_v54 = vpop.f32.mrf.mxu0  ;;  %v2783_v8 = vpop.f32.mrf.mxu1 }
 0x318   : > { %3273 = vst [vmem:[#allocation20_spill] sm:$0xff] %v2781_v54 }
 0x319   : > { %3274 = vst [vmem:[#allocation21_spill] sm:$0xff] %v2783_v8  ;;  %v1459_v3 = vmul.f32 1.442695, %v1389_v48  ;;  %v1461_v61 = vmul.f32 1.442695, %v1390_v59  ;;  %v2788_v12 = vpop.eup %2149 }
 0x31a   : > { %v2794_v24 = vpop.eup %2151 }
 0x31b   : > { %2153 = vpow2.f32 %v1459_v3  ;;  %622 = vperm.xlu2 %2140, %v559_v25  }
 0x31c   : > { %2155 = vpow2.f32 %v1461_v61 }
 0x31e   : > { %v2808_v48 = vpop.xlane.xlu2 %1300 }
 0x31f   : > { %v2790_v50 = vpop.f32.mrf.mxu0  ;;  %v2792_v28 = vpop.f32.mrf.mxu1 }
 0x320   : > { %3275 = vst [vmem:[#allocation22_spill] sm:$0xff] %v2790_v50 }
 0x321   : > { %3276 = vst [vmem:[#allocation23_spill] sm:$0xff] %v2792_v28  ;;  %v2796_v47 = vpop.eup %2153 }
 0x322   : > { %v2798_v43 = vpop.eup %2155 }
 0x327   : > { %v2804_v23 = vpop.f32.mrf.mxu0  ;;  %v2806_v61 = vpop.f32.mrf.mxu1 }
 0x328   : > { %v1347_v9 = vmax.f32 %v2804_v23, %v2806_v61 }
 0x32f   : > { %v2810_v25 = vpop.f32.mrf.mxu0  ;;  %v2812_v3 = vpop.f32.mrf.mxu1 }
 0x335   : > { %v2814_v58 = vpop.xlane.xlu2 %1309 }
 0x337   : > { %v2816_v57 = vpop.f32.mrf.mxu0  ;;  %v2818_v0 = vpop.f32.mrf.mxu1 }
 0x338   : > { %3277 = vst [vmem:[#allocation24_spill] sm:$0xff] %v2816_v57  ;;  %v1353_v36 = vmax.f32 %v2816_v57, %v2818_v0 }
 0x339   : > { %3278 = vst [vmem:[#allocation25_spill] sm:$0xff] %v2818_v0 }
 0x33a   : > { %1354 = vmax.xlane.f32.xlu1 %v1353_v36  ;;  %v2105_v36 = vld [vmem:[%s3217_s5 + $0x38] sm:$0xff] }
 0x33b   : > { %2026 = vmatmul.msk.bf16.gmra.mxu2 %vm693_vm2, %v2105_v36  ;;  %2035 = vmatmul.msk.bf16.gmra.mxu3 %vm693_vm2, %v2105_v36 }
 0x33e   : > { %v1313_v59 = vpop.xlane.xlu2 %1312 }
 0x33f   : > { %v2822_v63 = vpop.f32.mrf.mxu0  ;;  %v2824_v11 = vpop.f32.mrf.mxu1  ;;  %v1399_v5 = vsub.f32 %v2685_v44, %v1313_v59  ;;  %v1400_v4 = vsub.f32 %v2687_v45, %v1313_v59 }
 0x340   : > { %3279 = vst [vmem:[#allocation26_spill] sm:$0xff] %v2822_v63  ;;  %v1356_v10 = vmax.f32 %v2822_v63, %v2824_v11 }
 0x341   : > { %3280 = vst [vmem:[#allocation27_spill] sm:$0xff] %v2824_v11  ;;  %v1479_v13 = vmul.f32 1.442695, %v1399_v5  ;;  %v1481_v19 = vmul.f32 1.442695, %v1400_v4 }
 0x342   : > { %1357 = vmax.xlane.f32.xlu0 %v1356_v10 }
 0x343   : > { %2157 = vpow2.f32 %v1479_v13 }
 0x344   : > { %1348 = vmax.xlane.f32.xlu2 %v1347_v9  ;;  %2159 = vpow2.f32 %v1481_v19  ;;  %v1350_v9 = vmax.f32 %v2810_v25, %v2812_v3 }
 0x346   : > { %v1316_v14 = vpop.xlane.xlu2 %1315 }
 0x347   : > { %v1401_v44 = vsub.f32 %v2699_v53, %v1316_v14  ;;  %v1402_v45 = vsub.f32 %v2701_v55, %v1316_v14  ;;  %v2839_v10 = vpop.f32.mrf.mxu0  ;;  %v2841_v59 = vpop.f32.mrf.mxu1 }
 0x348   : > { %3281 = vst [vmem:[#allocation28_spill] sm:$0xff] %v2839_v10 }
 0x349   : > { %3282 = vst [vmem:[#allocation29_spill] sm:$0xff] %v2841_v59  ;;  %v1483_v22 = vmul.f32 1.442695, %v1401_v44  ;;  %v1485_v21 = vmul.f32 1.442695, %v1402_v45  ;;  %v2847_v5 = vpop.eup %2157 }
 0x34a   : > { %v2853_v55 = vpop.eup %2159 }
 0x34b   : > { %2161 = vpow2.f32 %v1483_v22  ;;  %v539_v22 = vld [vmem:[%s3217_s5 + $0x40] sm:$0xf] }
 0x34c   : > { %2163 = vpow2.f32 %v1485_v21  ;;  %1351 = vmax.xlane.f32.xlu2 %v1350_v9  ;;  %v1359_v21 = vmax.f32 %v2839_v10, %v2841_v59  ;;  %v683_v45 = vunpack.c.l.b16 %v539_v22 }
 0x34e   : > { %v2845_v4 = vpop.xlane.xlu2 %1318  ;;  %v692_v0 = vpack.c.b16 %v683_v45, %v683_v45 }
 0x34f   : > { %v2849_v53 = vpop.f32.mrf.mxu0  ;;  %v2851_v14 = vpop.f32.mrf.mxu1 }
 0x350   : > { %3283 = vst [vmem:[#allocation30_spill] sm:$0xff] %v2849_v53  ;;  %v1362_v13 = vmax.f32 %v2849_v53, %v2851_v14  ;;  %2027 = vmatmul.msk.bf16.gmra.mxu2 %vm693_vm2, %v692_v0  ;;  %2036 = vmatmul.msk.bf16.gmra.mxu3 %vm693_vm2, %v692_v0 }
 0x351   : > { %3284 = vst [vmem:[#allocation31_spill] sm:$0xff] %v2851_v14  ;;  %v2857_v19 = vpop.eup %2161 }
 0x352   : > { %v2859_v36 = vpop.eup %2163  ;;  %1363 = vmax.xlane.f32.xlu0 %v1362_v13 }
 0x354   : > { %1360 = vmax.xlane.f32.xlu2 %v1359_v21  ;;  %v1341_v21 = vmax.f32 %v2781_v54, %v2783_v8 }
 0x356   : > { %v2870_v57 = vpop.xlane.xlu2 %1321 }
 0x357   : > { %v2872_v11 = vpop.f32.mrf.mxu0  ;;  %v2874_v13 = vpop.f32.mrf.mxu1 }
 0x358   : > { %3285 = vst [vmem:[#allocation32_spill] sm:$0xff] %v2872_v11  ;;  %v1365_v63 = vmax.f32 %v2872_v11, %v2874_v13 }
 0x359   : > { %3286 = vst [vmem:[#allocation33_spill] sm:$0xff] %v2874_v13 }
 0x35a   : > { %1366 = vmax.xlane.f32.xlu0 %v1365_v63  ;;  %v1344_v63 = vmax.f32 %v2790_v50, %v2792_v28 }
 0x35e   : > { %v1325_v22 = vpop.xlane.xlu2 %1324 }
 0x35f   : > { %v2880_v44 = vpop.f32.mrf.mxu0  ;;  %v2882_v9 = vpop.f32.mrf.mxu1 }
 0x360   : > { %3287 = vst [vmem:[#allocation34_spill] sm:$0xff] %v2880_v44  ;;  %v1368_v45 = vmax.f32 %v2880_v44, %v2882_v9 }
 0x361   : > { %3288 = vst [vmem:[#allocation35_spill] sm:$0xff] %v2882_v9 }
 0x362   : > { %1342 = vmax.xlane.f32.xlu0 %v1341_v21  ;;  %1369 = vmax.xlane.f32.xlu1 %v1368_v45  ;;  %v1338_v21 = vmax.f32 %v2763_v51, %v2765_v62 }
 0x366   : > { %v1328_v59 = vpop.xlane.xlu2 %1327 }
 0x367   : > { %v2888_v10 = vpop.f32.mrf.mxu0  ;;  %v2890_v0 = vpop.f32.mrf.mxu1 }
 0x368   : > { %v1371_v14 = vmax.f32 %v2888_v10, %v2890_v0 }
 0x36a   : > { %1345 = vmax.xlane.f32.xlu0 %v1344_v63  ;;  %1372 = vmax.xlane.f32.xlu2 %v1371_v14 }
 0x36e   : > { %v1331_v53 = vpop.xlane.xlu2 %1330 }
 0x36f   : > { %v2896_v8 = vpop.f32.mrf.mxu0  ;;  %v2898_v54 = vpop.f32.mrf.mxu1  ;;  %v1411_v13 = vsub.f32 %v2739_v41, %v1331_v53  ;;  %v1412_v28 = vsub.f32 %v2741_v46, %v1331_v53  ;;  %v563_v41 = vld [vmem:[%s3218_s6 + $0x78] sm:$0xff]  ;;  %v1409_v46 = vsub.f32 %v2731_v49, %v1328_v59 }
 0x370   : > { %v1374_v45 = vmax.f32 %v2896_v8, %v2898_v54 }
 0x371   : > { %v1503_v50 = vmul.f32 1.442695, %v1411_v13  ;;  %v1505_v14 = vmul.f32 1.442695, %v1412_v28  ;;  %v1408_v13 = vsub.f32 %v2723_v29, %v1325_v22 }
 0x372   : > { %1339 = vmax.xlane.f32.xlu0 %v1338_v21  ;;  %1375 = vmax.xlane.f32.xlu2 %v1374_v45  ;;  %v1499_v21 = vmul.f32 1.442695, %v1409_v46  ;;  %v1405_v45 = vsub.f32 %v2713_v18, %v2870_v57  ;;  %v1403_v46 = vsub.f32 %v2705_v1, %v2845_v4  ;;  %v1404_v18 = vsub.f32 %v2707_v2, %v2845_v4  ;;  %v1772_v4 = vld [vmem:[%s2925_s12 + $0x18] sm:$0xff] }
 0x373   : > { %2165 = vpow2.f32 %v1503_v50 }
 0x374   : > { %2167 = vpow2.f32 %v1505_v14  ;;  %v1487_v1 = vmul.f32 1.442695, %v1403_v46  ;;  %v1398_v46 = vsub.f32 %v2681_v39, %v2814_v58 }
 0x376   : > { %v1334_v63 = vpop.xlane.xlu2 %1333 }
 0x377   : > { %v1413_v11 = vsub.f32 %v2747_v52, %v1334_v63  ;;  %v1414_v9 = vsub.f32 %v2749_v56, %v1334_v63  ;;  %v2908_v44 = vpop.f32.mrf.mxu0  ;;  %v2910_v62 = vpop.f32.mrf.mxu1  ;;  %v1410_v52 = vsub.f32 %v2733_v34, %v1328_v59  ;;  %v1407_v56 = vsub.f32 %v2721_v27, %v1325_v22 }
 0x378   : > { %v1377_v51 = vmax.f32 %v2908_v44, %v2910_v62  ;;  %v1497_v59 = vmul.f32 1.442695, %v1408_v13  ;;  %v1406_v63 = vsub.f32 %v2715_v20, %v2870_v57  ;;  %v1491_v57 = vmul.f32 1.442695, %v1405_v45 }
 0x379   : > { %v1507_v28 = vmul.f32 1.442695, %v1413_v11  ;;  %v1509_v53 = vmul.f32 1.442695, %v1414_v9  ;;  %v1501_v11 = vmul.f32 1.442695, %v1410_v52  ;;  %v2166_v49 = vpop.eup %2165 }
 0x37a   : > { %1378 = vmax.xlane.f32.xlu2 %v1377_v51  ;;  %v1495_v34 = vmul.f32 1.442695, %v1407_v56  ;;  %v2168_v27 = vpop.eup %2167  ;;  %v1769_v9 = vld [vmem:[%s2925_s12] sm:$0xff]  ;;  %v1493_v20 = vmul.f32 1.442695, %v1406_v63  ;;  %v1397_v63 = vsub.f32 %v2679_v38, %v2814_v58  ;;  %v562_v58 = vld [vmem:[%s3218_s6 + $0x70] sm:$0xff] }
 0x37b   : > { %2169 = vpow2.f32 %v1507_v28  ;;  %642 = vperm.xlu1 %2139, %v563_v41   ;;  %v1489_v13 = vmul.f32 1.442695, %v1404_v18 }
 0x37c   : > { %2171 = vpow2.f32 %v1509_v53  ;;  %v564_v53 = vld [vmem:[%s3218_s6 + $0x80] sm:$0xff] }
 0x37d   : > { %2173 = vpow2.f32 %v1499_v21  ;;  %v1770_v21 = vld [vmem:[%s2925_s12 + $0x8] sm:$0xff] }
 0x37e   : > { %2175 = vpow2.f32 %v1501_v11 }
 0x37f   : > { %v2927_v50 = vpop.f32.mrf.mxu0  ;;  %v2929_v51 = vpop.f32.mrf.mxu1  ;;  %2177 = vpow2.f32 %v1495_v34 }
 0x380   : > { %v1380_v29 = vmax.f32 %v2927_v50, %v2929_v51  ;;  %2179 = vpow2.f32 %v1497_v59 }
 0x381   : > { %v2170_v22 = vpop.eup %2169  ;;  %2181 = vpow2.f32 %v1491_v57  ;;  %v1775_v57 = vld [vmem:[%s2925_s12 + $0x30] sm:$0xff] }
 0x382   : > { %v2172_v14 = vpop.eup %2171  ;;  %1381 = vmax.xlane.f32.xlu2 %v1380_v29  ;;  %v1599_v41 = vpack.c.bf16 %v2170_v22, %v2166_v49  ;;  %2183 = vpow2.f32 %v1493_v20  ;;  %v2947_v29 = vpop.f32.mrf.mxu2  ;;  %v1771_v22 = vld [vmem:[%s2925_s12 + $0x10] sm:$0xff] }
 0x383   : > { %v1600_v28 = vpack.c.bf16 %v2172_v14, %v2168_v27  ;;  %1779 = vperm.xlu1 %2139, %v1769_v9   ;;  %v2174_v52 = vpop.eup %2173  ;;  %2185 = vpow2.f32 %v1487_v1  ;;  %v1307_v9 = vpop.xlane.xlu0 %1306 }
 0x384   : > { %1617 = vmatpush.bf16.xpose.msra.mxu2 %v1599_v41  ;;  %v2176_v56 = vpop.eup %2175  ;;  %2187 = vpow2.f32 %v1489_v13  ;;  %v2950_v14 = vpop.f32.mrf.mxu3  ;;  %v1396_v20 = vsub.f32 %v2673_v42, %v1307_v9  ;;  %v1773_v13 = vld [vmem:[%s2925_s12 + $0x20] sm:$0xff] }
 0x385   : > { %1650 = vmatpush.bf16.xpose.msra.mxu3 %v1600_v28  ;;  %v2178_v11 = vpop.eup %2177  ;;  %v1304_v1 = vpop.xlane.xlu1 %1303 }
 0x386   : > { %647 = vperm.xlu0 %2138, %v564_v53   ;;  %v2180_v49 = vpop.eup %2179  ;;  %v1597_v34 = vpack.c.bf16 %v2174_v52, %v2178_v11  ;;  %v1395_v53 = vsub.f32 %v2671_v33, %v1307_v9  ;;  %v1475_v52 = vmul.f32 1.442695, %v1397_v63  ;;  %v1473_v39 = vmul.f32 1.442695, %v1396_v20  ;;  %v623_v20 = vpop.permute.xlu2 %622 }
 0x387   : > { %v1598_v2 = vpack.c.bf16 %v2176_v56, %v2180_v49  ;;  %v2182_v27 = vpop.eup %2181  ;;  %v1477_v56 = vmul.f32 1.442695, %v1398_v46  ;;  %v1393_v33 = vsub.f32 %v2665_v32, %v1304_v1  ;;  %v1394_v11 = vsub.f32 %v2667_v60, %v1304_v1 }
 0x388   : > { %v2184_v59 = vpop.eup %2183  ;;  %v1471_v38 = vmul.f32 1.442695, %v1395_v53  ;;  %2189 = vpow2.f32 %v1475_v52  ;;  %v1391_v49 = vsub.f32 %v2657_v30, %v2808_v48  ;;  %v3289_v32 = vpack.c.bf16 %v2857_v19, %v2847_v5 }
 0x389   : > { %v2186_v45 = vpop.eup %2185  ;;  %2191 = vpow2.f32 %v1477_v56  ;;  %v3290_v60 = vpack.c.bf16 %v2859_v36, %v2853_v55  ;;  %v3291_v52 = vpack.c.bf16 %v2796_v47, %v2788_v12  ;;  %v3292_v1 = vpack.c.bf16 %v2798_v43, %v2794_v24 }
 0x38a   : > { %v2188_v41 = vpop.eup %2187  ;;  %v1595_v28 = vpack.c.bf16 %v2182_v27, %v2186_v45  ;;  %2193 = vpow2.f32 %v1471_v38  ;;  %v3294_v12 = vpack.c.bf16 %v2772_v15, %v2767_v16  ;;  %v751_v47 = vadd.f32 %v2947_v29, %v2719_v26 }
 0x38b   : > { %1784 = vperm.xlu1 %2139, %v1770_v21   ;;  %v1596_v18 = vpack.c.bf16 %v2184_v59, %v2188_v41  ;;  %v752_v21 = vpop.f32.mrf.mxu2  ;;  %2195 = vpow2.f32 %v1473_v39  ;;  %v1463_v59 = vmul.f32 1.442695, %v1391_v49 }
 0x38c   : > { %1618 = vmatpush.bf16.xpose.msra.mxu2 %v1597_v34  ;;  %v805_v42 = vpop.f32.mrf.mxu3  ;;  %v1392_v34 = vsub.f32 %v2659_v31, %v2808_v48 }
 0x38d   : > { %1651 = vmatpush.bf16.xpose.msra.mxu3 %v1598_v2  ;;  %v1467_v2 = vmul.f32 1.442695, %v1393_v33  ;;  %v3293_v33 = vpack.c.bf16 %v2769_v17, %v2761_v6  ;;  %v806_v43 = vadd.f32 %v805_v42, %v2729_v7 }
 0x38e   : > { %1794 = vperm.xlu0 %2138, %v1772_v4   ;;  %v1469_v4 = vmul.f32 1.442695, %v1394_v11  ;;  %v2190_v27 = vpop.eup %2189  ;;  %v1465_v30 = vmul.f32 1.442695, %v1392_v34  ;;  %v753_v11 = vadd.f32 %v752_v21, %v2729_v7  ;;  %v1335_v7 = vmax.f32 %v2757_v35, %v2759_v37 }
 0x38f   : > { %v2192_v9 = vpop.eup %2191  ;;  %2197 = vpow2.f32 %v1467_v2 }
 0x390   : > { %v2194_v45 = vpop.eup %2193  ;;  %2199 = vpow2.f32 %v1469_v4  ;;  %v2998_v21 = vpack.c.bf16 %v753_v11, %v751_v47 }
 0x391   : > { %v2196_v63 = vpop.eup %2195  ;;  %v1591_v31 = vpack.c.bf16 %v2190_v27, %v2194_v45  ;;  %2201 = vpow2.f32 %v1463_v59 }
 0x392   : > { %v1592_v48 = vpack.c.bf16 %v2192_v9, %v2196_v63  ;;  %2203 = vpow2.f32 %v1465_v30 }
 0x393   : > { %1789 = vperm.xlu1 %2139, %v1771_v22   ;;  %v1776_v22 = vld [vmem:[%s2925_s12 + $0x38] sm:$0xff]  ;;  %v755_v5 = vpop.f32.mrf.mxu2 }
 0x394   : > { %1619 = vmatpush.bf16.xpose.msra.mxu2 %v1595_v28  ;;  %v808_v19 = vpop.f32.mrf.mxu3  ;;  %v756_v30 = vadd.f32 %v755_v5, %v2737_v40 }
 0x395   : > { %1652 = vmatpush.bf16.xpose.msra.mxu3 %v1596_v18  ;;  %v2198_v55 = vpop.eup %2197 }
 0x396   : > { %1809 = vperm.xlu0 %2138, %v1775_v57   ;;  %v2200_v36 = vpop.eup %2199 }
 0x397   : > { %v2202_v41 = vpop.eup %2201 }
 0x398   : > { %v2204_v46 = vpop.eup %2203  ;;  %v1589_v28 = vpack.c.bf16 %v2198_v55, %v2202_v41 }
 0x399   : > { %v1590_v53 = vpack.c.bf16 %v2200_v36, %v2204_v46  ;;  %v1774_v46 = vld [vmem:[%s2925_s12 + $0x28] sm:$0xff] }
 0x39a   : > { %637 = vperm.xlu2 %2140, %v562_v58  }
 0x39b   : > { %1799 = vperm.xlu1 %2139, %v1773_v13   ;;  %v757_v18 = vpop.f32.mrf.mxu2 }
 0x39c   : > { %1620 = vmatpush.bf16.xpose.msra.mxu2 %v3289_v32  ;;  %v810_v57 = vpop.f32.mrf.mxu3  ;;  %v758_v59 = vadd.f32 %v757_v18, %v623_v20 }
 0x39d   : > { %1653 = vmatpush.bf16.xpose.msra.mxu3 %v3290_v60  ;;  %v811_v9 = vadd.f32 %v810_v57, %v623_v20 }
 0x39e   : > { %v3026_v63 = vpack.c.bf16 %v758_v59, %v756_v30 }
 0x3a3   : > { %1814 = vperm.xlu1 %2139, %v1776_v22   ;;  %v760_v56 = vpop.f32.mrf.mxu2  ;;  %v809_v22 = vadd.f32 %v808_v19, %v2737_v40  ;;  %v628_v19 = vpop.permute.xlu1 %627 }
 0x3a4   : > { %1621 = vmatpush.bf16.xpose.msra.mxu2 %v1591_v31  ;;  %v813_v38 = vpop.f32.mrf.mxu3  ;;  %v761_v57 = vadd.f32 %v760_v56, %v628_v19 }
 0x3a5   : > { %1654 = vmatpush.bf16.xpose.msra.mxu3 %v1592_v48  ;;  %v3028_v31 = vpack.c.bf16 %v811_v9, %v809_v22  ;;  %v814_v20 = vadd.f32 %v813_v38, %v628_v19 }
 0x3ab   : > { %v762_v34 = vpop.f32.mrf.mxu2 }
 0x3ac   : > { %1622 = vmatpush.bf16.xpose.msra.mxu2 %v1589_v28  ;;  %v815_v16 = vpop.f32.mrf.mxu3 }
 0x3ad   : > { %1655 = vmatpush.bf16.xpose.msra.mxu3 %v1590_v53  ;;  %v3049_v11 = vpop.xlane.xlu1 %1354 }
 0x3b4   : > { %1623 = vmatpush.bf16.xpose.msra.mxu2 %v3291_v52 }
 0x3b5   : > { %1656 = vmatpush.bf16.xpose.msra.mxu3 %v3292_v1 }
 0x3b7   : > { %v1349_v58 = vpop.xlane.xlu2 %1348 }
 0x3b8   : > { %v1423_v39 = vsub.f32 %v2804_v23, %v1349_v58  ;;  %v1424_v13 = vsub.f32 %v2806_v61, %v1349_v58  ;;  %v804_v61 = vadd.f32 %v2950_v14, %v2719_v26 }
 0x3ba   : > { %v1527_v24 = vmul.f32 1.442695, %v1423_v39  ;;  %v1529_v49 = vmul.f32 1.442695, %v1424_v13  ;;  %v3002_v15 = vpack.c.bf16 %v806_v43, %v804_v61 }
 0x3bc   : > { %1624 = vmatpush.bf16.xpose.msra.mxu2 %v3293_v33  ;;  %2205 = vpow2.f32 %v1527_v24 }
 0x3bd   : > { %1657 = vmatpush.bf16.xpose.msra.mxu3 %v3294_v12  ;;  %2207 = vpow2.f32 %v1529_v49 }
 0x3be   : > { %v3010_v14 = vpop.f32.mrf.mxu2  ;;  %v3012_v32 = vpop.f32.mrf.mxu3 }
 0x3bf   : > { %v1352_v23 = vpop.xlane.xlu2 %1351 }
 0x3c0   : > { %v1425_v6 = vsub.f32 %v2810_v25, %v1352_v23  ;;  %v1426_v17 = vsub.f32 %v2812_v3, %v1352_v23  ;;  %v633_v25 = vpop.permute.xlu0 %632 }
 0x3c1   : > { %v763_v28 = vadd.f32 %v762_v34, %v633_v25  ;;  %v816_v18 = vadd.f32 %v815_v16, %v633_v25 }
 0x3c2   : > { %v1531_v29 = vmul.f32 1.442695, %v1425_v6  ;;  %v1533_v42 = vmul.f32 1.442695, %v1426_v17  ;;  %v3006_v26 = vpop.eup %2205 }
 0x3c3   : > { %1625 = vmatmul.bf16.vlgmr.msra.gmra.mxu2 %v2998_v21  ;;  %1336 = vmax.xlane.f32.xlu2 %v1335_v7  ;;  %v3008_v3 = vpop.eup %2207  ;;  %v3041_v52 = vpack.c.bf16 %v763_v28, %v761_v57  ;;  %v3043_v1 = vpack.c.bf16 %v816_v18, %v814_v20  ;;  %v3295_v28 = vld [vmem:[#allocation34_spill] sm:$0xff]  ;;  %v3296_v20 = vld [vmem:[#allocation35_spill] sm:$0xff] }
 0x3c4   : > { %2209 = vpow2.f32 %v1531_v29  ;;  %1658 = vmatmul.bf16.vlgmr.msra.gmra.mxu3 %v3002_v15 }
 0x3c5   : > { %2211 = vpow2.f32 %v1533_v42 }
 0x3c6   : > { %v767_v48 = vpop.f32.mrf.mxu2  ;;  %v820_v55 = vpop.f32.mrf.mxu3 }
 0x3c7   : > { %v3032_v36 = vpop.xlane.xlu2 %1360 }
 0x3c8   : > { %v3024_v45 = vpop.xlane.xlu0 %1357 }
 0x3ca   : > { %v3014_v2 = vpop.eup %2209 }
 0x3cb   : > { %v3016_v60 = vpop.eup %2211  ;;  %v1605_v4 = vpack.c.bf16 %v3014_v2, %v3006_v26 }
 0x3cc   : > { %v1606_v27 = vpack.c.bf16 %v3016_v60, %v3008_v3 }
 0x3d0   : > { %v3034_v41 = vpop.xlane.xlu0 %1363 }
 0x3d3   : > { %1630 = vmatmul.bf16.gmra.mxu2 %v3026_v63  ;;  %v3037_v5 = vpop.f32.mrf.mxu2  ;;  %v3039_v40 = vpop.f32.mrf.mxu3 }
 0x3d4   : > { %1663 = vmatmul.bf16.gmra.mxu3 %v3028_v31 }
 0x3d5   : > { %v1370_v24 = vpop.xlane.xlu1 %1369 }
 0x3d6   : > { %v1437_v18 = vsub.f32 %v3295_v28, %v1370_v24 }
 0x3d8   : > { %v3045_v58 = vpop.xlane.xlu0 %1366 }
 0x3db   : > { %1804 = vperm.xlu2 %2140, %v1774_v46   ;;  %v772_v39 = vpop.f32.mrf.mxu2  ;;  %v825_v13 = vpop.f32.mrf.mxu3 }
 0x3dc   : > { %v1438_v39 = vsub.f32 %v3296_v20, %v1370_v24 }
 0x3dd   : > { %v1373_v53 = vpop.xlane.xlu2 %1372 }
 0x3de   : > { %v1439_v29 = vsub.f32 %v2888_v10, %v1373_v53 }
 0x3e0   : > { %v3051_v12 = vpop.xlane.xlu0 %1342  ;;  %v1559_v25 = vmul.f32 1.442695, %v1439_v29  ;;  %v3301_v29 = vld [vmem:[#allocation28_spill] sm:$0xff] }
 0x3e3   : > { %1635 = vmatmul.bf16.gmra.mxu2 %v3041_v52 }
 0x3e4   : > { %1668 = vmatmul.bf16.gmra.mxu3 %v3043_v1 }
 0x3e5   : > { %v1376_v33 = vpop.xlane.xlu2 %1375 }
 0x3e6   : > { %v1441_v34 = vsub.f32 %v2896_v8, %v1376_v33 }
 0x3e8   : > { %v3057_v17 = vpop.xlane.xlu0 %1345 }
 0x3ed   : > { %v1379_v43 = vpop.xlane.xlu2 %1378  ;;  %v643_v42 = vpop.permute.xlu1 %642 }
 0x3ee   : > { %v1443_v56 = vsub.f32 %v2908_v44, %v1379_v43  ;;  %v1444_v38 = vsub.f32 %v2910_v62, %v1379_v43  ;;  %v1442_v44 = vsub.f32 %v2898_v54, %v1376_v33  ;;  %v1440_v62 = vsub.f32 %v2890_v0, %v1373_v53  ;;  %v3298_v33 = vld [vmem:[#allocation33_spill] sm:$0xff] }
 0x3ef   : > { %v768_v30 = vadd.f32 %v767_v48, %v643_v42  ;;  %v821_v8 = vadd.f32 %v820_v55, %v643_v42  ;;  %v1436_v43 = vsub.f32 %v3298_v33, %v3045_v58 }
 0x3f0   : > { %v1567_v47 = vmul.f32 1.442695, %v1443_v56  ;;  %v1569_v49 = vmul.f32 1.442695, %v1444_v38  ;;  %v1561_v19 = vmul.f32 1.442695, %v1440_v62  ;;  %v3071_v13 = vpop.xlane.xlu0 %1339 }
 0x3f1   : > { %v1555_v56 = vmul.f32 1.442695, %v1437_v18  ;;  %v1557_v38 = vmul.f32 1.442695, %v1438_v39  ;;  %v3302_v62 = vld [vmem:[#allocation29_spill] sm:$0xff]  ;;  %v3305_v39 = vld [vmem:[#allocation24_spill] sm:$0xff] }
 0x3f2   : > { %2213 = vpow2.f32 %v1567_v47  ;;  %v3299_v47 = vld [vmem:[#allocation30_spill] sm:$0xff]  ;;  %v1432_v42 = vsub.f32 %v3302_v62, %v3032_v36 }
 0x3f3   : > { %2215 = vpow2.f32 %v1569_v49  ;;  %v1433_v49 = vsub.f32 %v3299_v47, %v3034_v41 }
 0x3f5   : > { %v1382_v23 = vpop.xlane.xlu2 %1381 }
 0x3f6   : > { %v1445_v61 = vsub.f32 %v2927_v50, %v1382_v23  ;;  %v1446_v6 = vsub.f32 %v2929_v51, %v1382_v23  ;;  %v1563_v50 = vmul.f32 1.442695, %v1441_v34  ;;  %v1565_v51 = vmul.f32 1.442695, %v1442_v44 }
 0x3f7   : > { %v1431_v44 = vsub.f32 %v3301_v29, %v3032_v36 }
 0x3f8   : > { %v1571_v16 = vmul.f32 1.442695, %v1445_v61  ;;  %v1573_v7 = vmul.f32 1.442695, %v1446_v6  ;;  %v2214_v9 = vpop.eup %2213  ;;  %v3300_v6 = vld [vmem:[#allocation31_spill] sm:$0xff] }
 0x3f9   : > { %v2216_v10 = vpop.eup %2215  ;;  %v1434_v34 = vsub.f32 %v3300_v6, %v3034_v41  ;;  %v1543_v41 = vmul.f32 1.442695, %v1431_v44  ;;  %v3308_v44 = vld [vmem:[#allocation23_spill] sm:$0xff] }
 0x3fa   : > { %2217 = vpow2.f32 %v1571_v16  ;;  %v1553_v16 = vmul.f32 1.442695, %v1436_v43 }
 0x3fb   : > { %2219 = vpow2.f32 %v1573_v7 }
 0x3fc   : > { %2221 = vpow2.f32 %v1563_v50  ;;  %v648_v50 = vpop.permute.xlu0 %647 }
 0x3fd   : > { %v638_v59 = vpop.permute.xlu2 %637  ;;  %2223 = vpow2.f32 %v1565_v51  ;;  %v1547_v51 = vmul.f32 1.442695, %v1433_v49 }
 0x3fe   : > { %v766_v22 = vadd.f32 %v3010_v14, %v638_v59  ;;  %v819_v46 = vadd.f32 %v3012_v32, %v638_v59  ;;  %v3297_v14 = vld [vmem:[#allocation32_spill] sm:$0xff]  ;;  %2225 = vpow2.f32 %v1559_v25 }
 0x3ff   : > { %v1435_v32 = vsub.f32 %v3297_v14, %v3045_v58  ;;  %2227 = vpow2.f32 %v1561_v19  ;;  %v3303_v19 = vld [vmem:[#allocation26_spill] sm:$0xff] }
 0x400   : > { %v2218_v54 = vpop.eup %2217  ;;  %v3066_v0 = vpack.c.bf16 %v768_v30, %v766_v22  ;;  %v3068_v53 = vpack.c.bf16 %v821_v8, %v819_v46  ;;  %2229 = vpow2.f32 %v1555_v56  ;;  %v771_v30 = vadd.f32 %v3037_v5, %v648_v50  ;;  %v3304_v5 = vld [vmem:[#allocation27_spill] sm:$0xff] }
 0x401   : > { %v2220_v57 = vpop.eup %2219  ;;  %v1615_v48 = vpack.c.bf16 %v2218_v54, %v2214_v9  ;;  %v1551_v23 = vmul.f32 1.442695, %v1435_v32  ;;  %2231 = vpow2.f32 %v1557_v38  ;;  %v1549_v9 = vmul.f32 1.442695, %v1434_v34  ;;  %v3306_v32 = vld [vmem:[#allocation25_spill] sm:$0xff] }
 0x402   : > { %1640 = vmatmul.bf16.gmra.mxu2 %v3066_v0  ;;  %1673 = vmatmul.bf16.gmra.mxu3 %v3068_v53  ;;  %v1616_v55 = vpack.c.bf16 %v2220_v57, %v2216_v10  ;;  %v2222_v24 = vpop.eup %2221  ;;  %v824_v8 = vadd.f32 %v3039_v40, %v648_v50  ;;  %v1545_v22 = vmul.f32 1.442695, %v1432_v42  ;;  %v1429_v54 = vsub.f32 %v3303_v19, %v3024_v45  ;;  %v3309_v42 = vld [vmem:[#allocation20_spill] sm:$0xff] }
 0x403   : > { %1683 = vmatpush.bf16.xpose.msrb.mxu2 %v1615_v48  ;;  %v2224_v61 = vpop.eup %2223  ;;  %2233 = vpow2.f32 %v1551_v23  ;;  %v3091_v28 = vpack.c.bf16 %v771_v30, %v771_v30  ;;  %v1430_v20 = vsub.f32 %v3304_v5, %v3024_v45  ;;  %v1427_v48 = vsub.f32 %v3305_v39, %v3049_v11 }
 0x404   : > { %1716 = vmatpush.bf16.xpose.msrb.mxu3 %v1616_v55  ;;  %v2226_v7 = vpop.eup %2225  ;;  %2235 = vpow2.f32 %v1553_v16  ;;  %v3093_v18 = vpack.c.bf16 %v824_v8, %v824_v8  ;;  %v1428_v55 = vsub.f32 %v3306_v32, %v3049_v11  ;;  %v1539_v43 = vmul.f32 1.442695, %v1429_v54  ;;  %v3307_v16 = vld [vmem:[#allocation22_spill] sm:$0xff]  ;;  %v3312_v54 = vld [vmem:[#allocation19_spill] sm:$0xff] }
 0x405   : > { %v2228_v58 = vpop.eup %2227  ;;  %v1613_v25 = vpack.c.bf16 %v2222_v24, %v2226_v7  ;;  %2237 = vpow2.f32 %v1547_v51  ;;  %v1541_v38 = vmul.f32 1.442695, %v1430_v20  ;;  %v1535_v24 = vmul.f32 1.442695, %v1427_v48  ;;  %v3310_v51 = vld [vmem:[#allocation21_spill] sm:$0xff] }
 0x406   : > { %v1614_v59 = vpack.c.bf16 %v2224_v61, %v2228_v58  ;;  %v2230_v46 = vpop.eup %2229  ;;  %2239 = vpow2.f32 %v1549_v9  ;;  %v1537_v49 = vmul.f32 1.442695, %v1428_v55  ;;  %v1421_v7 = vsub.f32 %v3307_v16, %v3057_v17 }
 0x407   : > { %v2232_v10 = vpop.eup %2231  ;;  %2241 = vpow2.f32 %v1543_v41  ;;  %v1422_v58 = vsub.f32 %v3308_v44, %v3057_v17  ;;  %v1419_v50 = vsub.f32 %v3309_v42, %v3051_v12  ;;  %v3314_v42 = vld [vmem:[#allocation17_spill] sm:$0xff] }
 0x408   : > { %2243 = vpow2.f32 %v1545_v22  ;;  %v1523_v9 = vmul.f32 1.442695, %v1421_v7  ;;  %v3139_v7 = vpop.permute.xlu0 %1794 }
 0x409   : > { %v2234_v36 = vpop.eup %2233  ;;  %2245 = vpow2.f32 %v1539_v43  ;;  %v1525_v41 = vmul.f32 1.442695, %v1422_v58  ;;  %v1519_v30 = vmul.f32 1.442695, %v1419_v50  ;;  %v3315_v50 = vld [vmem:[#allocation14_spill] sm:$0xff] }
 0x40a   : > { %v2236_v57 = vpop.eup %2235  ;;  %v1611_v40 = vpack.c.bf16 %v2230_v46, %v2234_v36  ;;  %2247 = vpow2.f32 %v1541_v38 }
 0x40b   : > { %1684 = vmatpush.bf16.xpose.msrb.mxu2 %v1613_v25  ;;  %v1612_v14 = vpack.c.bf16 %v2232_v10, %v2236_v57  ;;  %v2238_v33 = vpop.eup %2237  ;;  %2249 = vpow2.f32 %v1535_v24  ;;  %v3311_v10 = vld [vmem:[#allocation18_spill] sm:$0xff]  ;;  %v1418_v57 = vsub.f32 %v3312_v54, %v3071_v13 }
 0x40c   : > { %1717 = vmatpush.bf16.xpose.msrb.mxu3 %v1614_v59  ;;  %v2240_v56 = vpop.eup %2239  ;;  %2251 = vpow2.f32 %v1537_v49  ;;  %v1420_v59 = vsub.f32 %v3310_v51, %v3051_v12  ;;  %v1417_v36 = vsub.f32 %v3311_v10, %v3071_v13 }
 0x40d   : > { %v2242_v45 = vpop.eup %2241  ;;  %2253 = vpow2.f32 %v1523_v9  ;;  %v1517_v2 = vmul.f32 1.442695, %v1418_v57  ;;  %v3317_v57 = vld [vmem:[#allocation13_spill] sm:$0xff] }
 0x40e   : > { %v2244_v47 = vpop.eup %2243  ;;  %v1609_v23 = vpack.c.bf16 %v2238_v33, %v2242_v45  ;;  %v1521_v8 = vmul.f32 1.442695, %v1420_v59  ;;  %2255 = vpow2.f32 %v1525_v41  ;;  %v1515_v26 = vmul.f32 1.442695, %v1417_v36  ;;  %v3316_v41 = vld [vmem:[#allocation15_spill] sm:$0xff] }
 0x40f   : > { %v1610_v61 = vpack.c.bf16 %v2240_v56, %v2244_v47  ;;  %v2246_v6 = vpop.eup %2245  ;;  %2257 = vpow2.f32 %v1519_v30 }
 0x410   : > { %v2248_v11 = vpop.eup %2247  ;;  %2259 = vpow2.f32 %v1521_v8  ;;  %v3159_v54 = vpop.permute.xlu0 %1809 }
 0x411   : > { %v2250_v34 = vpop.eup %2249  ;;  %2261 = vpow2.f32 %v1515_v26 }
 0x412   : > { %1645 = vmatmul.bf16.gmra.mxu2 %v3091_v28  ;;  %1678 = vmatmul.bf16.gmra.mxu3 %v3093_v18  ;;  %v2252_v29 = vpop.eup %2251  ;;  %v1607_v62 = vpack.c.bf16 %v2246_v6, %v2250_v34  ;;  %2263 = vpow2.f32 %v1517_v2 }
 0x413   : > { %1685 = vmatpush.bf16.xpose.msrb.mxu2 %v1611_v40  ;;  %v1608_v25 = vpack.c.bf16 %v2248_v11, %v2252_v29  ;;  %v2254_v17 = vpop.eup %2253 }
 0x414   : > { %1718 = vmatpush.bf16.xpose.msrb.mxu3 %v1612_v14  ;;  %v2256_v12 = vpop.eup %2255 }
 0x415   : > { %v2258_v22 = vpop.eup %2257 }
 0x416   : > { %v2260_v46 = vpop.eup %2259  ;;  %v1603_v19 = vpack.c.bf16 %v2254_v17, %v2258_v22 }
 0x417   : > { %v1604_v5 = vpack.c.bf16 %v2256_v12, %v2260_v46  ;;  %v2262_v40 = vpop.eup %2261 }
 0x418   : > { %v2264_v39 = vpop.eup %2263 }
 0x41b   : > { %1686 = vmatpush.bf16.xpose.msrb.mxu2 %v1609_v23 }
 0x41c   : > { %1719 = vmatpush.bf16.xpose.msrb.mxu3 %v1610_v61 }
 0x423   : > { %1687 = vmatpush.bf16.xpose.msrb.mxu2 %v1607_v62  ;;  %v3313_v62 = vld [vmem:[#allocation16_spill] sm:$0xff] }
 0x424   : > { %1720 = vmatpush.bf16.xpose.msrb.mxu3 %v1608_v25  ;;  %v1823_v25 = vmul.f32 %v3139_v7, %v3315_v50 }
 0x42b   : > { %1688 = vmatpush.bf16.xpose.msrb.mxu2 %v1605_v4 }
 0x42c   : > { %1721 = vmatpush.bf16.xpose.msrb.mxu3 %v1606_v27 }
 0x433   : > { %1689 = vmatpush.bf16.xpose.msrb.mxu2 %v1603_v19 }
 0x434   : > { %1722 = vmatpush.bf16.xpose.msrb.mxu3 %v1604_v5 }
 0x436   : > { %v1337_v4 = vpop.xlane.xlu2 %1336 }
 0x437   : > { %v1415_v3 = vsub.f32 %v2757_v35, %v1337_v4  ;;  %v1416_v60 = vsub.f32 %v2759_v37, %v1337_v4 }
 0x439   : > { %v1511_v27 = vmul.f32 1.442695, %v1415_v3  ;;  %v1513_v20 = vmul.f32 1.442695, %v1416_v60 }
 0x43b   : > { %2265 = vpow2.f32 %v1511_v27 }
 0x43c   : > { %2267 = vpow2.f32 %v1513_v20 }
 0x43e   : > { %v3152_v22 = vpop.permute.xlu2 %1804 }
 0x441   : > { %v2266_v48 = vpop.eup %2265 }
 0x442   : > { %v2268_v13 = vpop.eup %2267  ;;  %v1601_v14 = vpack.c.bf16 %v2262_v40, %v2266_v48 }
 0x443   : > { %v1602_v32 = vpack.c.bf16 %v2264_v39, %v2268_v13  ;;  %v3318_v39 = vld [vmem:[#allocation10_spill] sm:$0xff] }
 0x444   : > { %1690 = vmatpush.bf16.xpose.msrb.mxu2 %v1601_v14  ;;  %v1827_v48 = vmul.f32 %v3152_v22, %v3318_v39 }
 0x445   : > { %1723 = vmatpush.bf16.xpose.msrb.mxu3 %v1602_v32  ;;  %v3319_v32 = vld [vmem:[#allocation8_spill] sm:$0xff] }
 0x446   : > { %v1626_v55 = vpop.f32.mrf.mxu2 }
 0x447   : > { %v1659_v33 = vpop.f32.mrf.mxu3 }
 0x448   : > { %v1660_v43 = vadd.f32 %v1659_v33, %v1626_v55  ;;  %v1829_v55 = vmul.f32 %v3159_v54, %v3319_v32 }
 0x44b   : > { %1691 = vmatmul.bf16.vlgmr.msrb.gmra.mxu2 %v2998_v21  ;;  %v3129_v21 = vpop.permute.xlu1 %1779 }
 0x44c   : > { %1724 = vmatmul.bf16.vlgmr.msrb.gmra.mxu3 %v3002_v15 }
 0x44e   : > { %v1628_v35 = vpop.f32.mrf.mxu2 }
 0x44f   : > { %v1661_v37 = vpop.f32.mrf.mxu3 }
 0x450   : > { %v1662_v56 = vadd.f32 %v1661_v37, %v1628_v35 }
 0x453   : > { %v3133_v61 = vpop.permute.xlu1 %1784 }
 0x456   : > { %v1631_v38 = vpop.f32.mrf.mxu2 }
 0x457   : > { %v1664_v45 = vpop.f32.mrf.mxu3 }
 0x458   : > { %v1665_v51 = vadd.f32 %v1664_v45, %v1631_v38 }
 0x45b   : > { %1696 = vmatmul.bf16.gmra.mxu2 %v3026_v63  ;;  %v3137_v11 = vpop.permute.xlu1 %1789 }
 0x45c   : > { %1729 = vmatmul.bf16.gmra.mxu3 %v3028_v31  ;;  %v1821_v30 = vmul.f32 %v3137_v11, %v3316_v41  ;;  %v3322_v41 = vld [vmem:[#allocation12_spill] sm:$0xff] }
 0x45e   : > { %v1633_v24 = vpop.f32.mrf.mxu2 }
 0x45f   : > { %v1666_v47 = vpop.f32.mrf.mxu3 }
 0x460   : > { %v1667_v59 = vadd.f32 %v1666_v47, %v1633_v24 }
 0x466   : > { %v1636_v49 = vpop.f32.mrf.mxu2 }
 0x467   : > { %v1669_v23 = vpop.f32.mrf.mxu3 }
 0x468   : > { %v1670_v8 = vadd.f32 %v1669_v23, %v1636_v49 }
 0x46b   : > { %1701 = vmatmul.bf16.gmra.mxu2 %v3041_v52 }
 0x46c   : > { %1734 = vmatmul.bf16.gmra.mxu3 %v3043_v1 }
 0x46e   : > { %v1638_v15 = vpop.f32.mrf.mxu2 }
 0x46f   : > { %v1671_v63 = vpop.f32.mrf.mxu3 }
 0x470   : > { %v1672_v17 = vadd.f32 %v1671_v63, %v1638_v15 }
 0x47b   : > { %1706 = vmatmul.bf16.gmra.mxu2 %v3066_v0 }
 0x47c   : > { %1739 = vmatmul.bf16.gmra.mxu3 %v3068_v53  ;;  %v3141_v53 = vpop.permute.xlu1 %1799 }
 0x47d   : > { %v1825_v5 = vmul.f32 %v3141_v53, %v3317_v57 }
 0x484   : > { %v3163_v3 = vpop.permute.xlu1 %1814 }
 0x485   : > { %v1641_v31 = vpop.f32.mrf.mxu2  ;;  %v1674_v6 = vpop.f32.mrf.mxu3 }
 0x486   : > { %v1675_v12 = vadd.f32 %v1674_v6, %v1641_v31 }
 0x48b   : > { %1711 = vmatmul.bf16.gmra.mxu2 %v3091_v28  ;;  %v1817_v28 = vmul.f32 %v3129_v21, %v3313_v62 }
 0x48c   : > { %1744 = vmatmul.bf16.gmra.mxu3 %v3093_v18  ;;  %v1819_v18 = vmul.f32 %v3133_v61, %v3314_v42 }
 0x48d   : > { %v1643_v52 = vpop.f32.mrf.mxu2  ;;  %v1676_v1 = vpop.f32.mrf.mxu3 }
 0x48e   : > { %v1677_v26 = vadd.f32 %v1676_v1, %v1643_v52 }
 0x495   : > { %v1646_v34 = vpop.f32.mrf.mxu2  ;;  %v1679_v16 = vpop.f32.mrf.mxu3 }
 0x496   : > { %v1680_v0 = vadd.f32 %v1679_v16, %v1646_v34 }
 0x498   : > { %2269 = vrcp.f32 %v1680_v0 }
 0x49d   : > { %v1648_v29 = vpop.f32.mrf.mxu2  ;;  %v1681_v44 = vpop.f32.mrf.mxu3 }
 0x49e   : > { %v2270_v58 = vpop.eup %2269 }
 0x49f   : > { %v1751_v9 = vperm.slane %v2270_v58, 0 }
 0x4a1   : > { %v1753_v46 = vmul.f32 %v1751_v9, %v1660_v43  ;;  %v1755_v10 = vmul.f32 %v1751_v9, %v1662_v56  ;;  %v1757_v36 = vmul.f32 %v1751_v9, %v1665_v51  ;;  %v1759_v19 = vmul.f32 %v1751_v9, %v1667_v59  ;;  %v3320_v43 = vld [vmem:[#allocation9_spill] sm:$0xff]  ;;  %v3321_v59 = vld [vmem:[#allocation11_spill] sm:$0xff] }
 0x4a2   : > { %v1761_v2 = vmul.f32 %v1751_v9, %v1670_v8  ;;  %v1763_v4 = vmul.f32 %v1751_v9, %v1672_v17  ;;  %v1765_v60 = vmul.f32 %v1751_v9, %v1675_v12  ;;  %v1767_v13 = vmul.f32 %v1751_v9, %v1677_v26  ;;  %v3323_v8 = vld [vmem:[#allocation6_spill] sm:$0xff] }
 0x4a3   : > { %v1833_v27 = vadd.f32 %v1817_v28, %v1753_v46  ;;  %v1835_v20 = vadd.f32 %v1819_v18, %v1755_v10  ;;  %v1837_v40 = vadd.f32 %v1821_v30, %v1757_v36  ;;  %v1839_v14 = vadd.f32 %v1823_v25, %v1759_v19  ;;  %v3324_v36 = vld [vmem:[#allocation7_spill] sm:$0xff] }
 0x4a4   : > { %v1841_v33 = vadd.f32 %v1825_v5, %v1761_v2  ;;  %v1831_v35 = vmul.f32 %v3163_v3, %v3320_v43  ;;  %v1843_v37 = vadd.f32 %v1827_v48, %v1763_v4  ;;  %v1845_v56 = vadd.f32 %v1829_v55, %v1765_v60 }
 0x4a5   : > { %1849 = vst [vmem:[%s3157_s19] sm:$0xff] %v1833_v27  ;;  %v1818_v9 = vmul.f32 %v3129_v21, %v3321_v59  ;;  %v1820_v30 = vmul.f32 %v3133_v61, %v3322_v41  ;;  %v1824_v17 = vmul.f32 %v3139_v7, %v3323_v8  ;;  %v1822_v19 = vmul.f32 %v3137_v11, %v3324_v36  ;;  %v3325_v27 = vld [vmem:[#allocation3_spill] sm:$0xff] }
 0x4a6   : > { %1851 = vst [vmem:[%s3157_s19 + $0x10] sm:$0xff] %v1835_v20  ;;  %v1847_v38 = vadd.f32 %v1831_v35, %v1767_v13  ;;  %v1826_v61 = vmul.f32 %v3141_v53, %v3325_v27  ;;  %v3327_v53 = vld [vmem:[#allocation2_spill] sm:$0xff] }
 0x4a7   : > { %1853 = vst [vmem:[%s3157_s19 + $0x20] sm:$0xff] %v1837_v40  ;;  %v1830_v43 = vmul.f32 %v3159_v54, %v3327_v53 }
 0x4a8   : > { %1855 = vst [vmem:[%s3157_s19 + $0x30] sm:$0xff] %v1839_v14  ;;  %v3326_v14 = vld [vmem:[#allocation4_spill] sm:$0xff] }
 0x4a9   : > { %1857 = vst [vmem:[%s3157_s19 + $0x40] sm:$0xff] %v1841_v33  ;;  %v1828_v32 = vmul.f32 %v3152_v22, %v3326_v14 }
 0x4aa   : > { %1859 = vst [vmem:[%s3157_s19 + $0x50] sm:$0xff] %v1843_v37  ;;  %v3328_v37 = vld [vmem:[#allocation5_spill] sm:$0xff] }
 0x4ab   : > { %1861 = vst [vmem:[%s3157_s19 + $0x60] sm:$0xff] %v1845_v56  ;;  %v1832_v56 = vmul.f32 %v3163_v3, %v3328_v37 }
 0x4ac   : > { %1863 = vst [vmem:[%s3157_s19 + $0x70] sm:$0xff] %v1847_v38 }
 0x4ce   : > { %v1692_v45 = vpop.f32.mrf.mxu2 }
 0x4cf   : > { %v1725_v24 = vpop.f32.mrf.mxu3 }
 0x4d0   : > { %v1726_v47 = vadd.f32 %v1725_v24, %v1692_v45 }
 0x4d6   : > { %v1694_v49 = vpop.f32.mrf.mxu2 }
 0x4d7   : > { %v1727_v23 = vpop.f32.mrf.mxu3 }
 0x4d8   : > { %v1728_v15 = vadd.f32 %v1727_v23, %v1694_v49 }
 0x4de   : > { %v1697_v63 = vpop.f32.mrf.mxu2 }
 0x4df   : > { %v1730_v31 = vpop.f32.mrf.mxu3 }
 0x4e0   : > { %v1731_v12 = vadd.f32 %v1730_v31, %v1697_v63 }
 0x4e6   : > { %v1699_v6 = vpop.f32.mrf.mxu2 }
 0x4e7   : > { %v1732_v52 = vpop.f32.mrf.mxu3 }
 0x4e8   : > { %v1733_v46 = vadd.f32 %v1732_v52, %v1699_v6 }
 0x4ee   : > { %v1702_v1 = vpop.f32.mrf.mxu2 }
 0x4ef   : > { %v1735_v34 = vpop.f32.mrf.mxu3 }
 0x4f0   : > { %v1736_v57 = vadd.f32 %v1735_v34, %v1702_v1 }
 0x4f6   : > { %v1704_v16 = vpop.f32.mrf.mxu2 }
 0x4f7   : > { %v1737_v0 = vpop.f32.mrf.mxu3 }
 0x4f8   : > { %v1738_v5 = vadd.f32 %v1737_v0, %v1704_v16 }
 0x4fe   : > { %v1707_v29 = vpop.f32.mrf.mxu2 }
 0x4ff   : > { %v1740_v44 = vpop.f32.mrf.mxu3 }
 0x500   : > { %v1741_v26 = vadd.f32 %v1740_v44, %v1707_v29 }
 0x506   : > { %v1709_v58 = vpop.f32.mrf.mxu2 }
 0x507   : > { %v1742_v62 = vpop.f32.mrf.mxu3 }
 0x508   : > { %v1743_v20 = vadd.f32 %v1742_v62, %v1709_v58 }
 0x50e   : > { %v1712_v28 = vpop.f32.mrf.mxu2 }
 0x50f   : > { %v1745_v42 = vpop.f32.mrf.mxu3 }
 0x510   : > { %v1746_v18 = vadd.f32 %v1745_v42, %v1712_v28 }
 0x512   : > { %2271 = vrcp.f32 %v1746_v18 }
 0x516   : > { %v1714_v50 = vpop.f32.mrf.mxu2 }
 0x517   : > { %v1747_v25 = vpop.f32.mrf.mxu3 }
 0x518   : > { %v2272_v51 = vpop.eup %2271 }
 0x519   : > { %v1752_v10 = vperm.slane %v2272_v51, 0 }
 0x51b   : > { %v1754_v2 = vmul.f32 %v1752_v10, %v1726_v47  ;;  %v1756_v4 = vmul.f32 %v1752_v10, %v1728_v15  ;;  %v1758_v60 = vmul.f32 %v1752_v10, %v1731_v12  ;;  %v1760_v21 = vmul.f32 %v1752_v10, %v1733_v46 }
 0x51c   : > { %v1762_v7 = vmul.f32 %v1752_v10, %v1736_v57  ;;  %v1764_v40 = vmul.f32 %v1752_v10, %v1738_v5  ;;  %v1766_v39 = vmul.f32 %v1752_v10, %v1741_v26  ;;  %v1768_v55 = vmul.f32 %v1752_v10, %v1743_v20 }
 0x51d   : > { %v1834_v48 = vadd.f32 %v1818_v9, %v1754_v2  ;;  %v1836_v11 = vadd.f32 %v1820_v30, %v1756_v4  ;;  %v1838_v13 = vadd.f32 %v1822_v19, %v1758_v60  ;;  %v1840_v33 = vadd.f32 %v1824_v17, %v1760_v21 }
 0x51e   : > { %v1842_v35 = vadd.f32 %v1826_v61, %v1762_v7  ;;  %v1844_v38 = vadd.f32 %v1828_v32, %v1764_v40  ;;  %v1846_v45 = vadd.f32 %v1830_v43, %v1766_v39  ;;  %v1848_v24 = vadd.f32 %v1832_v56, %v1768_v55 }
 0x51f   : > { %1850 = vst [vmem:[%s3157_s19 + $0x8] sm:$0xff] %v1834_v48 }
 0x520   : > { %1852 = vst [vmem:[%s3157_s19 + $0x18] sm:$0xff] %v1836_v11 }
 0x521   : > { %1854 = vst [vmem:[%s3157_s19 + $0x28] sm:$0xff] %v1838_v13 }
 0x522   : > { %1856 = vst [vmem:[%s3157_s19 + $0x38] sm:$0xff] %v1840_v33 }
 0x523   : > { %1858 = vst [vmem:[%s3157_s19 + $0x48] sm:$0xff] %v1842_v35 }
 0x524   : > { %1860 = vst [vmem:[%s3157_s19 + $0x58] sm:$0xff] %v1844_v38 }
 0x525   : > { %1862 = vst [vmem:[%s3157_s19 + $0x68] sm:$0xff] %v1846_v45 }
 0x526   : > { %1864 = vst [vmem:[%s3157_s19 + $0x78] sm:$0xff] %v1848_v24 }
 0x527 PF: > { %s18_s29 = sadd.s32 1, %s2295_s29   ;;  %s3329_s27 = smov %s2291_s28 }
 0x528   : > { %p15_p5 = scmp.ge.s32.totalorder %s18_s29, 4   ;;  %s3330_s28 = smov %s3332_s30 }
 0x52a   :  { %17 = sbr.rel (!%p15_p5) target bundleno = 2 (0x2), region = 85 }

</bundles_post_ra>
